<compile_context>
chip_gen: v7x
topology: tpu7x:2x2x1
jax: 0.10.0
libtpu: 0.0.40
codegen_flags: <defaults>
</compile_context>

<pallas_src>
import functools

import jax
import jax.numpy as jnp
from jax.experimental import pallas as pl
from jax.experimental.pallas import tpu as pltpu

BN_EPS = 1e-5
NUM_PHASES = 3  # layer-1 stats, layer-2 stats, apply


def _mlp_bn_gauss_kernel(neg_inv_two_var, n_real,
                         x_ref,
                         w1_ref, g1_ref, be1_ref,
                         w2_ref, g2_ref, be2_ref,
                         w3_ref, b3_ref,
                         out_ref,
                         sum1_ref, sq1_ref, sum2_ref, sq2_ref):
    """Streaming 3-phase forward in natural (batch_tile, features) layout.

    x_ref  : (TB, d_in)   f32
    wK_ref : (in, out)    matmul dtype (bf16 or f32), pre-transposed
    gK/beK : (1, hidden)  f32 BatchNorm affine params
    b3_ref : (1, d_out)   f32
    out_ref: (TB, d_out)  f32 (only written in the final phase)
    sum*/sq*: (1, hidden) f32 persistent stats accumulators
    """
    p = pl.program_id(0)          # phase
    i = pl.program_id(1)          # batch tile
    tb = x_ref.shape[0]           # static tile size
    inv_b = 1.0 / n_real          # static python float (real batch size)

    @pl.when((p == 0) & (i == 0))
    def _init_stats():
        sum1_ref[...] = jnp.zeros_like(sum1_ref)
        sq1_ref[...] = jnp.zeros_like(sq1_ref)
        sum2_ref[...] = jnp.zeros_like(sum2_ref)
        sq2_ref[...] = jnp.zeros_like(sq2_ref)

    x = x_ref[...]                # (TB, d_in) f32; padded rows are zero

    def matmul(h, w_ref):
        # MXU matmul: bf16 (or f32) operands, f32 accumulation.
        return jnp.dot(h.astype(w_ref.dtype), w_ref[...],
                       preferred_element_type=jnp.float32)

    def bn_scale_shift(sum_ref, sq_ref, g_ref, be_ref):
        mean = sum_ref[...] * inv_b                          # (1, F)
        var = jnp.maximum(sq_ref[...] * inv_b - mean * mean, 0.0)
        scale = g_ref[...] * jax.lax.rsqrt(var + BN_EPS)
        shift = be_ref[...] - mean * scale
        return scale, shift

    # Layer-1 pre-activations are needed by every phase.  Padded rows give
    # exactly 0 (zero input, pre-BN bias cancelled), so layer-1 sums are
    # unaffected by padding.
    y1 = matmul(x, w1_ref)                                   # (TB, F1) f32

    @pl.when(p == 0)
    def _phase0_layer1_stats():
        sum1_ref[...] += jnp.sum(y1, axis=0, keepdims=True)
        sq1_ref[...] += jnp.sum(y1 * y1, axis=0, keepdims=True)

    @pl.when(p == 1)
    def _phase1_layer2_stats():
        s1, t1 = bn_scale_shift(sum1_ref, sq1_ref, g1_ref, be1_ref)
        h1 = jnp.maximum(y1 * s1 + t1, 0.0)                  # (TB, F1)
        # relu(shift1) != 0 for padded rows -> mask them out of layer-2 stats.
        rows = jax.lax.broadcasted_iota(jnp.int32, (tb, 1), 0)
        n_valid = n_real - i * tb
        h1 = jnp.where(rows < n_valid, h1, 0.0)
        y2 = matmul(h1, w2_ref)                              # (TB, F2)
        sum2_ref[...] += jnp.sum(y2, axis=0, keepdims=True)
        sq2_ref[...] += jnp.sum(y2 * y2, axis=0, keepdims=True)

    @pl.when(p == NUM_PHASES - 1)
    def _phase2_apply():
        s1, t1 = bn_scale_shift(sum1_ref, sq1_ref, g1_ref, be1_ref)
        h1 = jnp.maximum(y1 * s1 + t1, 0.0)
        y2 = matmul(h1, w2_ref)
        s2, t2 = bn_scale_shift(sum2_ref, sq2_ref, g2_ref, be2_ref)
        h2 = jnp.maximum(y2 * s2 + t2, 0.0)
        y3 = matmul(h2, w3_ref) + b3_ref[...]                # (TB, d_out)
        # Gaussian decay envelope: one VPU mul chain + EUP exp (no divide).
        gaussian = jnp.exp((x * x) * neg_inv_two_var)        # (TB, d_in)
        out_ref[...] = y3 * gaussian                         # padded rows sliced off


def _vmem_limit_bytes():
    # Generation-aware scoped-VMEM budget: half of physical capacity, capped
    # at 64 MiB (-> 64 MiB on v5e/v6e's 128 MiB, 32 MiB on v7x's 64 MiB).
    try:
        cap = int(pltpu.get_tpu_info().vmem_capacity_bytes)
        return min(cap // 2, 64 * 1024 * 1024)
    except Exception:
        return 32 * 1024 * 1024


def net_relu_xavier_bn_decay_gaussian(x, params, gaussian_std,
                                      matmul_dtype=jnp.bfloat16,
                                      tile_b=None):
    """x: (batch, d_in) f32 -> (batch, d_out) f32.

    params = [(W1, b1, g1, be1), (W2, b2, g2, be2), (W3, b3)] with W in the
    PyTorch (out, in) layout.  b1/b2 are accepted for structural fidelity but
    are mathematically cancelled by training-mode BN and are not used.
    """
    (w1, _b1, g1, be1), (w2, _b2, g2, be2), (w3, b3) = params
    d_in, f1, f2, d_out = w1.shape[1], w1.shape[0], w2.shape[0], w3.shape[0]
    batch = x.shape[0]
    assert x.shape[1] == d_in
    # out * gaussian(x) is elementwise -> the module implicitly requires this.
    assert d_in == d_out, "gaussian envelope requires Layers[0] == Layers[-1]"

    # Batch tile: multiple of 128 lanes-worth of rows; 512 for large batches.
    if tile_b is None:
        tile_b = min(512, 128 * pl.cdiv(batch, 128))
    num_tiles = pl.cdiv(batch, tile_b)
    b_pad = num_tiles * tile_b

    x = jnp.asarray(x, jnp.float32)
    if b_pad != batch:
        x = jnp.pad(x, ((0, b_pad - batch), (0, 0)))  # zero rows (required)

    def row(v):   # per-feature vectors as (1, F) rows (broadcast over sublanes)
        return jnp.asarray(v, jnp.float32).reshape(1, -1)

    def wt(w):    # pre-transpose tiny weights to (in, out) + cast for the MXU
        return jnp.asarray(w, jnp.float32).T.astype(matmul_dtype)

    args = (x,
            wt(w1), row(g1), row(be1),
            wt(w2), row(g2), row(be2),
            wt(w3), row(b3))

    const_map = lambda p, i: (0, 0)      # resident: fetched once, reused
    in_specs = [pl.BlockSpec((tile_b, d_in), lambda p, i: (i, 0))]
    in_specs += [pl.BlockSpec(a.shape, const_map) for a in args[1:]]
    # Output tile only advances in the final (apply) phase -> no garbage /
    # duplicate HBM writes during the stats phases.
    out_specs = pl.BlockSpec(
        (tile_b, d_out),
        lambda p, i: (jnp.where(p == NUM_PHASES - 1, i, 0), 0))

    scratch_shapes = [
        pltpu.VMEM((1, f1), jnp.float32),   # sum1
        pltpu.VMEM((1, f1), jnp.float32),   # sumsq1
        pltpu.VMEM((1, f2), jnp.float32),   # sum2
        pltpu.VMEM((1, f2), jnp.float32),   # sumsq2
    ]

    neg_inv_two_var = -1.0 / (2.0 * float(gaussian_std) * float(gaussian_std))
    # gaussian_std is a module-construction constant -> baked in statically.
    # If it must vary at runtime, pass neg_inv_two_var as an SMEM scalar.
    kernel = functools.partial(_mlp_bn_gauss_kernel, neg_inv_two_var, batch)

    itemsize = jnp.dtype(matmul_dtype).itemsize
    mm_flops = 2 * b_pad * (3 * d_in * f1 + 2 * f1 * f2 + f2 * d_out)
    bytes_accessed = (3 * b_pad * d_in * 4 + b_pad * d_out * 4 +
                      (d_in * f1 + f1 * f2 + f2 * d_out) * itemsize +
                      (2 * f1 + 2 * f2 + d_out) * 4)
    cost = pl.CostEstimate(flops=int(mm_flops),
                           transcendentals=int(b_pad * d_in),
                           bytes_accessed=int(bytes_accessed))

    out = pl.pallas_call(
        kernel,
        out_shape=jax.ShapeDtypeStruct((b_pad, d_out), jnp.float32),
        grid=(NUM_PHASES, num_tiles),
        in_specs=in_specs,
        out_specs=out_specs,
        scratch_shapes=scratch_shapes,
        compiler_params=pltpu.CompilerParams(
            # Both axes are sequential: phases are ordered and tiles within a
            # phase share the stats accumulators.
            dimension_semantics=("arbitrary", "arbitrary"),
            vmem_limit_bytes=_vmem_limit_bytes()),
        cost_estimate=cost,
    )(*args)

    return out[:batch] if b_pad != batch else out


def init_params(key, layers):
    """Matches the PyTorch module init: xavier_normal_ weights (kept in the
    PyTorch (out, in) layout), default U(-1/sqrt(fan_in), 1/sqrt(fan_in))
    biases, BatchNorm gamma=1 / beta=0."""
    params = []
    n_layers = len(layers) - 1
    for li, (d_in, d_out) in enumerate(zip(layers, layers[1:])):
        key, kw, kb = jax.random.split(key, 3)
        xavier_std = (2.0 / (d_in + d_out)) ** 0.5
        w = xavier_std * jax.random.normal(kw, (d_out, d_in), dtype=jnp.float32)
        bound = 1.0 / (d_in ** 0.5)
        b = jax.random.uniform(kb, (d_out,), jnp.float32, -bound, bound)
        if li < n_layers - 1:
            gamma = jnp.ones((d_out,), jnp.float32)
            beta = jnp.zeros((d_out,), jnp.float32)
            params.append((w, b, gamma, beta))
        else:
            params.append((w, b))
    return params


def reference_forward(x, params, gaussian_std):
    """Pure-JAX f32 reference of the PyTorch forward (biases included, two-pass
    variance) used for correctness checking."""
    (w1, b1, g1, be1), (w2, b2, g2, be2), (w3, b3) = params

    def lbr(h, w, b, g, be):
        y = h @ w.T + b
        mean = y.mean(axis=0, keepdims=True)
        var = ((y - mean) ** 2).mean(axis=0, keepdims=True)
        yn = (y - mean) / jnp.sqrt(var + BN_EPS)
        return jnp.maximum(yn * g + be, 0.0)

    h = lbr(x, w1, b1, g1, be1)
    h = lbr(h, w2, b2, g2, be2)
    h = h @ w3.T + b3
    return h * jnp.exp(-x ** 2 / (2 * gaussian_std ** 2))


if __name__ == "__main__":
    Layers = [8, 32, 32, 8]   # first == last so the gaussian broadcast is elementwise
    gaussian_std = 0.7

    key = jax.random.PRNGKey(0)
    key, kx1, kx2 = jax.random.split(key, 3)
    params = init_params(key, Layers)

    # ---- Small case (batch 16, single tile, exercises padding/masking) ----
    x_small = jax.random.normal(kx1, (16, Layers[0]), dtype=jnp.float32)
    ref_small = reference_forward(x_small, params, gaussian_std)

    out_f32 = jax.block_until_ready(
        net_relu_xavier_bn_decay_gaussian(x_small, params, gaussian_std,
                                          matmul_dtype=jnp.float32))
    assert out_f32.shape == (16, Layers[-1])
    assert jnp.allclose(out_f32, ref_small, atol=5e-4, rtol=5e-4), \
        "f32 mismatch vs reference (small batch)"

    out_bf16 = jax.block_until_ready(
        net_relu_xavier_bn_decay_gaussian(x_small, params, gaussian_std,
                                          matmul_dtype=jnp.bfloat16))
    assert out_bf16.shape == (16, Layers[-1])
    assert bool(jnp.all(jnp.isfinite(out_bf16)))
    assert jnp.allclose(out_bf16, ref_small, atol=5e-2, rtol=5e-2), \
        "bf16 mismatch vs reference (small batch)"

    # ---- Larger ragged case: multiple tiles + cross-tile stats + padding ----
    x_big = jax.random.normal(kx2, (300, Layers[0]), dtype=jnp.float32)
    ref_big = reference_forward(x_big, params, gaussian_std)

    out_big_f32 = jax.block_until_ready(
        net_relu_xavier_bn_decay_gaussian(x_big, params, gaussian_std,
                                          matmul_dtype=jnp.float32,
                                          tile_b=128))     # 3 tiles, 84 pad rows
    assert out_big_f32.shape == (300, Layers[-1])
    assert jnp.allclose(out_big_f32, ref_big, atol=2e-3, rtol=2e-3), \
        "f32 mismatch vs reference (multi-tile batch)"

    out_big_bf16 = jax.block_until_ready(
        net_relu_xavier_bn_decay_gaussian(x_big, params, gaussian_std,
                                          matmul_dtype=jnp.bfloat16,
                                          tile_b=128))
    assert out_big_bf16.shape == (300, Layers[-1])
    assert bool(jnp.all(jnp.isfinite(out_big_bf16)))
    assert jnp.allclose(out_big_bf16, ref_big, atol=5e-2, rtol=5e-2), \
        "bf16 mismatch vs reference (multi-tile batch)"

    print("KERNEL_OK")
</pallas_src>

<mosaic_0001>
module attributes {stable_mosaic.version = 11 : i64} {
  func.func @_mlp_bn_gauss_kernel(%arg0: i32, %arg1: i32, %arg2: memref<128x8xf32, #tpu.memory_space<vmem>>, %arg3: memref<8x32xf32, #tpu.memory_space<vmem>>, %arg4: memref<1x32xf32, #tpu.memory_space<vmem>>, %arg5: memref<1x32xf32, #tpu.memory_space<vmem>>, %arg6: memref<32x32xf32, #tpu.memory_space<vmem>>, %arg7: memref<1x32xf32, #tpu.memory_space<vmem>>, %arg8: memref<1x32xf32, #tpu.memory_space<vmem>>, %arg9: memref<32x8xf32, #tpu.memory_space<vmem>>, %arg10: memref<1x8xf32, #tpu.memory_space<vmem>>, %arg11: memref<128x8xf32, #tpu.memory_space<vmem>>, %arg12: memref<1x32xf32, #tpu.memory_space<vmem>>, %arg13: memref<1x32xf32, #tpu.memory_space<vmem>>, %arg14: memref<1x32xf32, #tpu.memory_space<vmem>>, %arg15: memref<1x32xf32, #tpu.memory_space<vmem>>) attributes {dimension_semantics = [#tpu.dimension_semantics<arbitrary>, #tpu.dimension_semantics<arbitrary>], iteration_bounds = array<i64: 3, 1>, scalar_prefetch = 0 : i64, scratch_operands = 4 : i64, tpu.core_type = #tpu.core_type<tc>, window_params = [{transform_indices = @transform_0, window_bounds = array<i64: 128, 8>}, {pipeline_mode = #tpu.pipeline_mode<synchronous>, transform_indices = @transform_1, window_bounds = array<i64: 8, 32>}, {pipeline_mode = #tpu.pipeline_mode<synchronous>, transform_indices = @transform_2, window_bounds = array<i64: 1, 32>}, {pipeline_mode = #tpu.pipeline_mode<synchronous>, transform_indices = @transform_3, window_bounds = array<i64: 1, 32>}, {pipeline_mode = #tpu.pipeline_mode<synchronous>, transform_indices = @transform_4, window_bounds = array<i64: 32, 32>}, {pipeline_mode = #tpu.pipeline_mode<synchronous>, transform_indices = @transform_5, window_bounds = array<i64: 1, 32>}, {pipeline_mode = #tpu.pipeline_mode<synchronous>, transform_indices = @transform_6, window_bounds = array<i64: 1, 32>}, {pipeline_mode = #tpu.pipeline_mode<synchronous>, transform_indices = @transform_7, window_bounds = array<i64: 32, 8>}, {pipeline_mode = #tpu.pipeline_mode<synchronous>, transform_indices = @transform_8, window_bounds = array<i64: 1, 8>}, {transform_indices = @transform_9, window_bounds = array<i64: 128, 8>}]} {
    %c0_i32 = arith.constant 0 : i32
    %0 = arith.cmpi eq, %arg0, %c0_i32 : i32
    %c0_i32_0 = arith.constant 0 : i32
    %1 = arith.cmpi eq, %arg1, %c0_i32_0 : i32
    %2 = arith.andi %0, %1 : i1
    %3 = arith.extui %2 : i1 to i32
    %c0_i32_1 = arith.constant 0 : i32
    %4 = arith.cmpi ne, %3, %c0_i32_1 : i32
    scf.if %4 {
      %cst_9 = arith.constant 0.000000e+00 : f32
      %17 = vector.broadcast %cst_9 : f32 to vector<1x32xf32>
      %c0_10 = arith.constant 0 : index
      %c0_11 = arith.constant 0 : index
      %18 = vector.load %arg12[%c0_10, %c0_11] : memref<1x32xf32, #tpu.memory_space<vmem>>, vector<1x32xf32>
      tpu.vector_store %arg12[%c0_10, %c0_11], %17 {strides = array<i32>} : memref<1x32xf32, #tpu.memory_space<vmem>>, vector<1x32xf32>,
      %cst_12 = arith.constant 0.000000e+00 : f32
      %19 = vector.broadcast %cst_12 : f32 to vector<1x32xf32>
      %c0_13 = arith.constant 0 : index
      %c0_14 = arith.constant 0 : index
      %20 = vector.load %arg13[%c0_13, %c0_14] : memref<1x32xf32, #tpu.memory_space<vmem>>, vector<1x32xf32>
      tpu.vector_store %arg13[%c0_13, %c0_14], %19 {strides = array<i32>} : memref<1x32xf32, #tpu.memory_space<vmem>>, vector<1x32xf32>,
      %cst_15 = arith.constant 0.000000e+00 : f32
      %21 = vector.broadcast %cst_15 : f32 to vector<1x32xf32>
      %c0_16 = arith.constant 0 : index
      %c0_17 = arith.constant 0 : index
      %22 = vector.load %arg14[%c0_16, %c0_17] : memref<1x32xf32, #tpu.memory_space<vmem>>, vector<1x32xf32>
      tpu.vector_store %arg14[%c0_16, %c0_17], %21 {strides = array<i32>} : memref<1x32xf32, #tpu.memory_space<vmem>>, vector<1x32xf32>,
      %cst_18 = arith.constant 0.000000e+00 : f32
      %23 = vector.broadcast %cst_18 : f32 to vector<1x32xf32>
      %c0_19 = arith.constant 0 : index
      %c0_20 = arith.constant 0 : index
      %24 = vector.load %arg15[%c0_19, %c0_20] : memref<1x32xf32, #tpu.memory_space<vmem>>, vector<1x32xf32>
      tpu.vector_store %arg15[%c0_19, %c0_20], %23 {strides = array<i32>} : memref<1x32xf32, #tpu.memory_space<vmem>>, vector<1x32xf32>,
    } else {
    }
    %c0 = arith.constant 0 : index
    %c0_2 = arith.constant 0 : index
    %5 = vector.load %arg2[%c0, %c0_2] : memref<128x8xf32, #tpu.memory_space<vmem>>, vector<128x8xf32>
    %c0_3 = arith.constant 0 : index
    %c0_4 = arith.constant 0 : index
    %6 = vector.load %arg3[%c0_3, %c0_4] : memref<8x32xf32, #tpu.memory_space<vmem>>, vector<8x32xf32>
    %cst = arith.constant dense<0.000000e+00> : vector<128x32xf32>
    %7 = tpu.matmul %5, %6, %cst {dimension_numbers = #tpu.dot_dimension_numbers<[1], [0], [0], [1], [0, 0, 1, 1], [], []>} : vector<128x8xf32>, vector<8x32xf32>, vector<128x32xf32> -> vector<128x32xf32>
    %c0_i32_5 = arith.constant 0 : i32
    %8 = arith.cmpi eq, %arg0, %c0_i32_5 : i32
    %9 = arith.extui %8 : i1 to i32
    %c0_i32_6 = arith.constant 0 : i32
    %10 = arith.cmpi ne, %9, %c0_i32_6 : i32
    scf.if %10 {
      %c0_9 = arith.constant 0 : index
      %c0_10 = arith.constant 0 : index
      %17 = vector.load %arg12[%c0_9, %c0_10] : memref<1x32xf32, #tpu.memory_space<vmem>>, vector<1x32xf32>
      %cst_11 = arith.constant dense<0.000000e+00> : vector<32xf32>
      %18 = vector.multi_reduction <add>, %7, %cst_11 [0] : vector<128x32xf32> to vector<32xf32>
      %19 = vector.shape_cast %18 : vector<32xf32> to vector<1x32xf32>
      %20 = arith.addf %17, %19 : vector<1x32xf32>
      %c0_12 = arith.constant 0 : index
      %c0_13 = arith.constant 0 : index
      %21 = vector.load %arg12[%c0_12, %c0_13] : memref<1x32xf32, #tpu.memory_space<vmem>>, vector<1x32xf32>
      tpu.vector_store %arg12[%c0_12, %c0_13], %20 {strides = array<i32>} : memref<1x32xf32, #tpu.memory_space<vmem>>, vector<1x32xf32>,
      %c0_14 = arith.constant 0 : index
      %c0_15 = arith.constant 0 : index
      %22 = vector.load %arg13[%c0_14, %c0_15] : memref<1x32xf32, #tpu.memory_space<vmem>>, vector<1x32xf32>
      %23 = arith.mulf %7, %7 : vector<128x32xf32>
      %cst_16 = arith.constant dense<0.000000e+00> : vector<32xf32>
      %24 = vector.multi_reduction <add>, %23, %cst_16 [0] : vector<128x32xf32> to vector<32xf32>
      %25 = vector.shape_cast %24 : vector<32xf32> to vector<1x32xf32>
      %26 = arith.addf %22, %25 : vector<1x32xf32>
      %c0_17 = arith.constant 0 : index
      %c0_18 = arith.constant 0 : index
      %27 = vector.load %arg13[%c0_17, %c0_18] : memref<1x32xf32, #tpu.memory_space<vmem>>, vector<1x32xf32>
      tpu.vector_store %arg13[%c0_17, %c0_18], %26 {strides = array<i32>} : memref<1x32xf32, #tpu.memory_space<vmem>>, vector<1x32xf32>,
    } else {
    }
    %c1_i32 = arith.constant 1 : i32
    %11 = arith.cmpi eq, %arg0, %c1_i32 : i32
    %12 = arith.extui %11 : i1 to i32
    %c0_i32_7 = arith.constant 0 : i32
    %13 = arith.cmpi ne, %12, %c0_i32_7 : i32
    scf.if %13 {
      %c0_9 = arith.constant 0 : index
      %c0_10 = arith.constant 0 : index
      %17 = vector.load %arg12[%c0_9, %c0_10] : memref<1x32xf32, #tpu.memory_space<vmem>>, vector<1x32xf32>
      %cst_11 = arith.constant 6.250000e-02 : f32
      %18 = vector.broadcast %cst_11 : f32 to vector<1x32xf32>
      %19 = arith.mulf %17, %18 : vector<1x32xf32>
      %c0_12 = arith.constant 0 : index
      %c0_13 = arith.constant 0 : index
      %20 = vector.load %arg13[%c0_12, %c0_13] : memref<1x32xf32, #tpu.memory_space<vmem>>, vector<1x32xf32>
      %cst_14 = arith.constant 6.250000e-02 : f32
      %21 = vector.broadcast %cst_14 : f32 to vector<1x32xf32>
      %22 = arith.mulf %20, %21 : vector<1x32xf32>
      %23 = arith.mulf %19, %19 : vector<1x32xf32>
      %24 = arith.subf %22, %23 : vector<1x32xf32>
      %cst_15 = arith.constant 0.000000e+00 : f32
      %25 = vector.broadcast %cst_15 : f32 to vector<1x32xf32>
      %26 = arith.maximumf %24, %25 : vector<1x32xf32>
      %c0_16 = arith.constant 0 : index
      %c0_17 = arith.constant 0 : index
      %27 = vector.load %arg4[%c0_16, %c0_17] : memref<1x32xf32, #tpu.memory_space<vmem>>, vector<1x32xf32>
      %cst_18 = arith.constant 9.99999974E-6 : f32
      %28 = vector.broadcast %cst_18 : f32 to vector<1x32xf32>
      %29 = arith.addf %26, %28 : vector<1x32xf32>
      %30 = math.rsqrt %29 : vector<1x32xf32>
      %31 = arith.mulf %27, %30 : vector<1x32xf32>
      %c0_19 = arith.constant 0 : index
      %c0_20 = arith.constant 0 : index
      %32 = vector.load %arg5[%c0_19, %c0_20] : memref<1x32xf32, #tpu.memory_space<vmem>>, vector<1x32xf32>
      %33 = arith.mulf %19, %31 : vector<1x32xf32>
      %34 = arith.subf %32, %33 : vector<1x32xf32>
      %35 = vector.broadcast %31 : vector<1x32xf32> to vector<128x32xf32>
      %36 = arith.mulf %7, %35 : vector<128x32xf32>
      %37 = vector.broadcast %34 : vector<1x32xf32> to vector<128x32xf32>
      %38 = arith.addf %36, %37 : vector<128x32xf32>
      %cst_21 = arith.constant 0.000000e+00 : f32
      %39 = vector.broadcast %cst_21 : f32 to vector<128x32xf32>
      %40 = arith.maximumf %38, %39 : vector<128x32xf32>
      %41 = tpu.iota {dimensions = array<i32: 0>} : vector<128x1xi32>
      %c128_i32 = arith.constant 128 : i32
      %42 = arith.muli %arg1, %c128_i32 : i32
      %c16_i32 = arith.constant 16 : i32
      %43 = arith.subi %c16_i32, %42 : i32
      %44 = vector.broadcast %43 : i32 to vector<128x1xi32>
      %45 = arith.cmpi slt, %41, %44 : vector<128x1xi32>
      %cst_22 = arith.constant 0.000000e+00 : f32
      %46 = vector.shape_cast %45 : vector<128x1xi1> to vector<128x1xi1>
      %47 = vector.broadcast %46 : vector<128x1xi1> to vector<128x32xi1>
      %48 = vector.broadcast %cst_22 : f32 to vector<128x32xf32>
      %49 = arith.select %47, %40, %48 : vector<128x32xi1>, vector<128x32xf32>
      %c0_23 = arith.constant 0 : index
      %c0_24 = arith.constant 0 : index
      %50 = vector.load %arg6[%c0_23, %c0_24] : memref<32x32xf32, #tpu.memory_space<vmem>>, vector<32x32xf32>
      %cst_25 = arith.constant dense<0.000000e+00> : vector<128x32xf32>
      %51 = tpu.matmul %49, %50, %cst_25 {dimension_numbers = #tpu.dot_dimension_numbers<[1], [0], [0], [1], [0, 0, 1, 1], [], []>} : vector<128x32xf32>, vector<32x32xf32>, vector<128x32xf32> -> vector<128x32xf32>
      %c0_26 = arith.constant 0 : index
      %c0_27 = arith.constant 0 : index
      %52 = vector.load %arg14[%c0_26, %c0_27] : memref<1x32xf32, #tpu.memory_space<vmem>>, vector<1x32xf32>
      %cst_28 = arith.constant dense<0.000000e+00> : vector<32xf32>
      %53 = vector.multi_reduction <add>, %51, %cst_28 [0] : vector<128x32xf32> to vector<32xf32>
      %54 = vector.shape_cast %53 : vector<32xf32> to vector<1x32xf32>
      %55 = arith.addf %52, %54 : vector<1x32xf32>
      %c0_29 = arith.constant 0 : index
      %c0_30 = arith.constant 0 : index
      %56 = vector.load %arg14[%c0_29, %c0_30] : memref<1x32xf32, #tpu.memory_space<vmem>>, vector<1x32xf32>
      tpu.vector_store %arg14[%c0_29, %c0_30], %55 {strides = array<i32>} : memref<1x32xf32, #tpu.memory_space<vmem>>, vector<1x32xf32>,
      %c0_31 = arith.constant 0 : index
      %c0_32 = arith.constant 0 : index
      %57 = vector.load %arg15[%c0_31, %c0_32] : memref<1x32xf32, #tpu.memory_space<vmem>>, vector<1x32xf32>
      %58 = arith.mulf %51, %51 : vector<128x32xf32>
      %cst_33 = arith.constant dense<0.000000e+00> : vector<32xf32>
      %59 = vector.multi_reduction <add>, %58, %cst_33 [0] : vector<128x32xf32> to vector<32xf32>
      %60 = vector.shape_cast %59 : vector<32xf32> to vector<1x32xf32>
      %61 = arith.addf %57, %60 : vector<1x32xf32>
      %c0_34 = arith.constant 0 : index
      %c0_35 = arith.constant 0 : index
      %62 = vector.load %arg15[%c0_34, %c0_35] : memref<1x32xf32, #tpu.memory_space<vmem>>, vector<1x32xf32>
      tpu.vector_store %arg15[%c0_34, %c0_35], %61 {strides = array<i32>} : memref<1x32xf32, #tpu.memory_space<vmem>>, vector<1x32xf32>,
    } else {
    }
    %c2_i32 = arith.constant 2 : i32
    %14 = arith.cmpi eq, %arg0, %c2_i32 : i32
    %15 = arith.extui %14 : i1 to i32
    %c0_i32_8 = arith.constant 0 : i32
    %16 = arith.cmpi ne, %15, %c0_i32_8 : i32
    scf.if %16 {
      %c0_9 = arith.constant 0 : index
      %c0_10 = arith.constant 0 : index
      %17 = vector.load %arg12[%c0_9, %c0_10] : memref<1x32xf32, #tpu.memory_space<vmem>>, vector<1x32xf32>
      %cst_11 = arith.constant 6.250000e-02 : f32
      %18 = vector.broadcast %cst_11 : f32 to vector<1x32xf32>
      %19 = arith.mulf %17, %18 : vector<1x32xf32>
      %c0_12 = arith.constant 0 : index
      %c0_13 = arith.constant 0 : index
      %20 = vector.load %arg13[%c0_12, %c0_13] : memref<1x32xf32, #tpu.memory_space<vmem>>, vector<1x32xf32>
      %cst_14 = arith.constant 6.250000e-02 : f32
      %21 = vector.broadcast %cst_14 : f32 to vector<1x32xf32>
      %22 = arith.mulf %20, %21 : vector<1x32xf32>
      %23 = arith.mulf %19, %19 : vector<1x32xf32>
      %24 = arith.subf %22, %23 : vector<1x32xf32>
      %cst_15 = arith.constant 0.000000e+00 : f32
      %25 = vector.broadcast %cst_15 : f32 to vector<1x32xf32>
      %26 = arith.maximumf %24, %25 : vector<1x32xf32>
      %c0_16 = arith.constant 0 : index
      %c0_17 = arith.constant 0 : index
      %27 = vector.load %arg4[%c0_16, %c0_17] : memref<1x32xf32, #tpu.memory_space<vmem>>, vector<1x32xf32>
      %cst_18 = arith.constant 9.99999974E-6 : f32
      %28 = vector.broadcast %cst_18 : f32 to vector<1x32xf32>
      %29 = arith.addf %26, %28 : vector<1x32xf32>
      %30 = math.rsqrt %29 : vector<1x32xf32>
      %31 = arith.mulf %27, %30 : vector<1x32xf32>
      %c0_19 = arith.constant 0 : index
      %c0_20 = arith.constant 0 : index
      %32 = vector.load %arg5[%c0_19, %c0_20] : memref<1x32xf32, #tpu.memory_space<vmem>>, vector<1x32xf32>
      %33 = arith.mulf %19, %31 : vector<1x32xf32>
      %34 = arith.subf %32, %33 : vector<1x32xf32>
      %35 = vector.broadcast %31 : vector<1x32xf32> to vector<128x32xf32>
      %36 = arith.mulf %7, %35 : vector<128x32xf32>
      %37 = vector.broadcast %34 : vector<1x32xf32> to vector<128x32xf32>
      %38 = arith.addf %36, %37 : vector<128x32xf32>
      %cst_21 = arith.constant 0.000000e+00 : f32
      %39 = vector.broadcast %cst_21 : f32 to vector<128x32xf32>
      %40 = arith.maximumf %38, %39 : vector<128x32xf32>
      %c0_22 = arith.constant 0 : index
      %c0_23 = arith.constant 0 : index
      %41 = vector.load %arg6[%c0_22, %c0_23] : memref<32x32xf32, #tpu.memory_space<vmem>>, vector<32x32xf32>
      %cst_24 = arith.constant dense<0.000000e+00> : vector<128x32xf32>
      %42 = tpu.matmul %40, %41, %cst_24 {dimension_numbers = #tpu.dot_dimension_numbers<[1], [0], [0], [1], [0, 0, 1, 1], [], []>} : vector<128x32xf32>, vector<32x32xf32>, vector<128x32xf32> -> vector<128x32xf32>
      %c0_25 = arith.constant 0 : index
      %c0_26 = arith.constant 0 : index
      %43 = vector.load %arg14[%c0_25, %c0_26] : memref<1x32xf32, #tpu.memory_space<vmem>>, vector<1x32xf32>
      %cst_27 = arith.constant 6.250000e-02 : f32
      %44 = vector.broadcast %cst_27 : f32 to vector<1x32xf32>
      %45 = arith.mulf %43, %44 : vector<1x32xf32>
      %c0_28 = arith.constant 0 : index
      %c0_29 = arith.constant 0 : index
      %46 = vector.load %arg15[%c0_28, %c0_29] : memref<1x32xf32, #tpu.memory_space<vmem>>, vector<1x32xf32>
      %cst_30 = arith.constant 6.250000e-02 : f32
      %47 = vector.broadcast %cst_30 : f32 to vector<1x32xf32>
      %48 = arith.mulf %46, %47 : vector<1x32xf32>
      %49 = arith.mulf %45, %45 : vector<1x32xf32>
      %50 = arith.subf %48, %49 : vector<1x32xf32>
      %cst_31 = arith.constant 0.000000e+00 : f32
      %51 = vector.broadcast %cst_31 : f32 to vector<1x32xf32>
      %52 = arith.maximumf %50, %51 : vector<1x32xf32>
      %c0_32 = arith.constant 0 : index
      %c0_33 = arith.constant 0 : index
      %53 = vector.load %arg7[%c0_32, %c0_33] : memref<1x32xf32, #tpu.memory_space<vmem>>, vector<1x32xf32>
      %cst_34 = arith.constant 9.99999974E-6 : f32
      %54 = vector.broadcast %cst_34 : f32 to vector<1x32xf32>
      %55 = arith.addf %52, %54 : vector<1x32xf32>
      %56 = math.rsqrt %55 : vector<1x32xf32>
      %57 = arith.mulf %53, %56 : vector<1x32xf32>
      %c0_35 = arith.constant 0 : index
      %c0_36 = arith.constant 0 : index
      %58 = vector.load %arg8[%c0_35, %c0_36] : memref<1x32xf32, #tpu.memory_space<vmem>>, vector<1x32xf32>
      %59 = arith.mulf %45, %57 : vector<1x32xf32>
      %60 = arith.subf %58, %59 : vector<1x32xf32>
      %61 = vector.broadcast %57 : vector<1x32xf32> to vector<128x32xf32>
      %62 = arith.mulf %42, %61 : vector<128x32xf32>
      %63 = vector.broadcast %60 : vector<1x32xf32> to vector<128x32xf32>
      %64 = arith.addf %62, %63 : vector<128x32xf32>
      %cst_37 = arith.constant 0.000000e+00 : f32
      %65 = vector.broadcast %cst_37 : f32 to vector<128x32xf32>
      %66 = arith.maximumf %64, %65 : vector<128x32xf32>
      %c0_38 = arith.constant 0 : index
      %c0_39 = arith.constant 0 : index
      %67 = vector.load %arg9[%c0_38, %c0_39] : memref<32x8xf32, #tpu.memory_space<vmem>>, vector<32x8xf32>
      %cst_40 = arith.constant dense<0.000000e+00> : vector<128x8xf32>
      %68 = tpu.matmul %66, %67, %cst_40 {dimension_numbers = #tpu.dot_dimension_numbers<[1], [0], [0], [1], [0, 0, 1, 1], [], []>} : vector<128x32xf32>, vector<32x8xf32>, vector<128x8xf32> -> vector<128x8xf32>
      %c0_41 = arith.constant 0 : index
      %c0_42 = arith.constant 0 : index
      %69 = vector.load %arg10[%c0_41, %c0_42] : memref<1x8xf32, #tpu.memory_space<vmem>>, vector<1x8xf32>
      %70 = vector.broadcast %69 : vector<1x8xf32> to vector<128x8xf32>
      %71 = arith.addf %68, %70 : vector<128x8xf32>
      %72 = arith.mulf %5, %5 : vector<128x8xf32>
      %cst_43 = arith.constant -1.02040815 : f32
      %73 = vector.broadcast %cst_43 : f32 to vector<128x8xf32>
      %74 = arith.mulf %72, %73 : vector<128x8xf32>
      %75 = math.exp %74 : vector<128x8xf32>
      %76 = arith.mulf %71, %75 : vector<128x8xf32>
      %c0_44 = arith.constant 0 : index
      %c0_45 = arith.constant 0 : index
      %77 = vector.load %arg11[%c0_44, %c0_45] : memref<128x8xf32, #tpu.memory_space<vmem>>, vector<128x8xf32>
      tpu.vector_store %arg11[%c0_44, %c0_45], %76 {strides = array<i32>} : memref<128x8xf32, #tpu.memory_space<vmem>>, vector<128x8xf32>,
    } else {
    }
    return
  }
  func.func @transform_0(%arg0: i32, %arg1: i32) -> (i32, i32) {
    %c0_i32 = arith.constant 0 : i32
    %c0_i32_0 = arith.constant 0 : i32
    return %arg1, %c0_i32 : i32, i32
  }
  func.func @transform_1(%arg0: i32, %arg1: i32) -> (i32, i32) {
    %c0_i32 = arith.constant 0 : i32
    %c0_i32_0 = arith.constant 0 : i32
    %c0_i32_1 = arith.constant 0 : i32
    return %c0_i32, %c0_i32_0 : i32, i32
  }
  func.func @transform_2(%arg0: i32, %arg1: i32) -> (i32, i32) {
    %c0_i32 = arith.constant 0 : i32
    %c0_i32_0 = arith.constant 0 : i32
    %c0_i32_1 = arith.constant 0 : i32
    return %c0_i32, %c0_i32_0 : i32, i32
  }
  func.func @transform_3(%arg0: i32, %arg1: i32) -> (i32, i32) {
    %c0_i32 = arith.constant 0 : i32
    %c0_i32_0 = arith.constant 0 : i32
    %c0_i32_1 = arith.constant 0 : i32
    return %c0_i32, %c0_i32_0 : i32, i32
  }
  func.func @transform_4(%arg0: i32, %arg1: i32) -> (i32, i32) {
    %c0_i32 = arith.constant 0 : i32
    %c0_i32_0 = arith.constant 0 : i32
    %c0_i32_1 = arith.constant 0 : i32
    return %c0_i32, %c0_i32_0 : i32, i32
  }
  func.func @transform_5(%arg0: i32, %arg1: i32) -> (i32, i32) {
    %c0_i32 = arith.constant 0 : i32
    %c0_i32_0 = arith.constant 0 : i32
    %c0_i32_1 = arith.constant 0 : i32
    return %c0_i32, %c0_i32_0 : i32, i32
  }
  func.func @transform_6(%arg0: i32, %arg1: i32) -> (i32, i32) {
    %c0_i32 = arith.constant 0 : i32
    %c0_i32_0 = arith.constant 0 : i32
    %c0_i32_1 = arith.constant 0 : i32
    return %c0_i32, %c0_i32_0 : i32, i32
  }
  func.func @transform_7(%arg0: i32, %arg1: i32) -> (i32, i32) {
    %c0_i32 = arith.constant 0 : i32
    %c0_i32_0 = arith.constant 0 : i32
    %c0_i32_1 = arith.constant 0 : i32
    return %c0_i32, %c0_i32_0 : i32, i32
  }
  func.func @transform_8(%arg0: i32, %arg1: i32) -> (i32, i32) {
    %c0_i32 = arith.constant 0 : i32
    %c0_i32_0 = arith.constant 0 : i32
    %c0_i32_1 = arith.constant 0 : i32
    return %c0_i32, %c0_i32_0 : i32, i32
  }
  func.func @transform_9(%arg0: i32, %arg1: i32) -> (i32, i32) {
    %c2_i32 = arith.constant 2 : i32
    %0 = arith.cmpi eq, %arg0, %c2_i32 : i32
    %c0_i32 = arith.constant 0 : i32
    %1 = arith.select %0, %arg1, %c0_i32 : i32
    %c0_i32_0 = arith.constant 0 : i32
    %c0_i32_1 = arith.constant 0 : i32
    return %1, %c0_i32_0 : i32, i32
  }
}

</mosaic_0001>

<bundles_post_ra>
// kernel: tpu_custom_call.1
= control target key start
LH: loop header
LB: loop body
LE: loop exit
PB: predicated region body
PF: predicated region fallthrough
CT: control target
= control target key end

     0   :  { %s2296_s30 = smov 0   ;;  %s2298_s10 = smov 0   ;;  %s2878_s0 = inlined_call_operand.vmem [shape: f32[128,8], index: 0, kind: input, shape index: {}]   ;;  %s2879_s1 = inlined_call_operand.vmem [shape: f32[8,32], index: 1, kind: input, shape index: {}]   ;;  %s2880_s2 = inlined_call_operand.vmem [shape: f32[1,32], index: 2, kind: input, shape index: {}]   ;;  %s2881_s3 = inlined_call_operand.vmem [shape: f32[1,32], index: 3, kind: input, shape index: {}]   ;;  %s2882_s4 = inlined_call_operand.vmem [shape: f32[32,32], index: 4, kind: input, shape index: {}]   ;;  %s2883_s5 = inlined_call_operand.vmem [shape: f32[1,32], index: 5, kind: input, shape index: {}]   ;;  %s2884_s6 = inlined_call_operand.vmem [shape: f32[1,32], index: 6, kind: input, shape index: {}]   ;;  %s2885_s7 = inlined_call_operand.vmem [shape: f32[32,8], index: 7, kind: input, shape index: {}]   ;;  %s2886_s8 = inlined_call_operand.vmem [shape: f32[1,8], index: 8, kind: input, shape index: {}]   ;;  %s2887_s9 = inlined_call_operand.vmem [shape: f32[128,8], index: 9, kind: output, shape index: {}]  }
   0x1   :  { %s2300_s11 = smov 0  }
   0x2 LB: > { %s31_s12 = sadd.s32 1, %s2238_s10  ;;  %p1866_p0 = scmp.ge.s32.totalorder %s2242_s11, 1  ;;  %s2242_s11 = sphi %s2300_s11, %s19_s11   ;;  %s2238_s10 = sphi %s2298_s10, %s2889_s10   ;;  %s2234_s30 = sphi %s2296_s30, %s2888_s30  }
   0x3   : > { %p33_p1 = scmp.ge.s32.totalorder %s31_s12, 3  ;;  %p304_p2 = scmp.lt.s32.totalorder %s2242_s11, 4 }
   0x5   : > { %s2891_s12 = smov (%p33_p1, %s31_s12), 0  ;;  %p305_p3 = pnand %p1866_p0, %p304_p2 }
   0x6   : > { %p358_p4 = scmp.eq.s32.totalorder (!%p305_p3), %s2234_s30, 0 }
   0x7   : > { %308 = sbr.rel (%p305_p3) target bundleno = 1093 (0x445), region = 56 }
   0xe   : > { %363 = sbr.rel (!%p358_p4) target bundleno = 21 (0x15), region = 60  ;;  %vm364_vm0 = vcmask (%p358_p4), 253952   ;;  %v2244_v0 = vmov (%p358_p4), 0.0  }
   0xf   : > { %365 = vst.msk [vmem:[#allocation2] sm:$0x1] (%p358_p4), %vm364_vm0, %v2244_v0  ;;  %366 = vst.msk [vmem:[#allocation3] sm:$0x1] (%p358_p4), %vm364_vm0, %v2244_v0 }
  0x10   : > { %367 = vst.msk [vmem:[#allocation4] sm:$0x1] (%p358_p4), %vm364_vm0, %v2244_v0  ;;  %368 = vst.msk [vmem:[#allocation5] sm:$0x1] (%p358_p4), %vm364_vm0, %v2244_v0 }
  0x15 PF: > { %v385_v1 = vld [vmem:[%s2879_s1] sm:$0xff]  ;;  %vm386_vm1 = vcmask 64512   ;;  %v2333_v4 = vld [vmem:[%s2878_s0 + $0x8] sm:$0xff]  ;;  %v2343_v6 = vld [vmem:[%s2878_s0 + $0x10] sm:$0xff]  ;;  %p1884_p5 = scmp.ne.s32.totalorder %s2234_s30, 0 }
  0x16   : > { %v2323_v2 = vld [vmem:[%s2878_s0] sm:$0xff]  ;;  %2004 = vmatprep.subr.mxu0 %v385_v1  ;;  %2150 = vmatprep.subr.mxu1 %v385_v1  ;;  %v2338_v5 = vld [vmem:[%s2878_s0 + $0x48] sm:$0xff]  ;;  %v2348_v7 = vld [vmem:[%s2878_s0 + $0x50] sm:$0xff]  ;;  %vm584_vm2 = vcmask (!%p1884_p5), 261120   ;;  %vm623_vm3 = vcmask (!%p1884_p5), 253952  }
  0x17   : > { %v2328_v3 = vld [vmem:[%s2878_s0 + $0x40] sm:$0xff]  ;;  %2005 = vmatpush3.msra.mxu0 %v385_v1  ;;  %2151 = vmatpush3.msra.mxu1 %v385_v1  ;;  %v2365_v8 = vld [vmem:[%s2878_s0 + $0x18] sm:$0xff]  ;;  %v2393_v12 = vld [vmem:[%s2878_s0 + $0x28] sm:$0xff] }
  0x18   : > { %2006 = vmatprep.mubr.msk.f32.mxu0 %vm386_vm1, %v2323_v2  ;;  %2018 = vmatprep.mubr.msk.f32.mxu1 %vm386_vm1, %v2328_v3  ;;  %v2370_v9 = vld [vmem:[%s2878_s0 + $0x58] sm:$0xff]  ;;  %v2375_v10 = vld [vmem:[%s2878_s0 + $0x20] sm:$0xff]  ;;  %v2398_v13 = vld [vmem:[%s2878_s0 + $0x68] sm:$0xff] }
  0x19   : > { %2007 = vmatmul.mubr.msk.f32.vlgmr.msra.gmra.mrb[0].mxu0 %vm386_vm1, %v2333_v4  ;;  %2019 = vmatmul.mubr.msk.f32.vlgmr.msra.gmra.mrb[0].mxu1 %vm386_vm1, %v2338_v5  ;;  %v2380_v11 = vld [vmem:[%s2878_s0 + $0x60] sm:$0xff]  ;;  %v2403_v14 = vld [vmem:[%s2878_s0 + $0x30] sm:$0xff]  ;;  %v2421_v16 = vld [vmem:[%s2878_s0 + $0x38] sm:$0xff] }
  0x1a   : > { %2009 = vmatprep.mubr.msk.f32.mxu0 %vm386_vm1, %v2343_v6  ;;  %2021 = vmatprep.mubr.msk.f32.mxu1 %vm386_vm1, %v2348_v7  ;;  %v2408_v15 = vld [vmem:[%s2878_s0 + $0x70] sm:$0xff]  ;;  %v2426_v17 = vld [vmem:[%s2878_s0 + $0x78] sm:$0xff] }
  0x1d   : > { %2010 = vmatmul.mubr.msk.f32.gmra.mrb[2].mxu0 %vm386_vm1, %v2365_v8  ;;  %2022 = vmatmul.mubr.msk.f32.gmra.mrb[2].mxu1 %vm386_vm1, %v2370_v9 }
  0x1e   : > { %2012 = vmatprep.mubr.msk.f32.mxu0 %vm386_vm1, %v2375_v10  ;;  %2024 = vmatprep.mubr.msk.f32.mxu1 %vm386_vm1, %v2380_v11 }
  0x21   : > { %2013 = vmatmul.mubr.msk.f32.gmra.mrb[4].mxu0 %vm386_vm1, %v2393_v12  ;;  %2025 = vmatmul.mubr.msk.f32.gmra.mrb[4].mxu1 %vm386_vm1, %v2398_v13 }
  0x22   : > { %2015 = vmatprep.mubr.msk.f32.mxu0 %vm386_vm1, %v2403_v14  ;;  %2027 = vmatprep.mubr.msk.f32.mxu1 %vm386_vm1, %v2408_v15 }
  0x25   : > { %2016 = vmatmul.mubr.msk.f32.gmra.mrb[6].mxu0 %vm386_vm1, %v2421_v16  ;;  %2028 = vmatmul.mubr.msk.f32.gmra.mrb[6].mxu1 %vm386_vm1, %v2426_v17 }
  0xec   : > { %v2432_v18 = vpop.f32.mrb[0].mxu0  ;;  %v2434_v19 = vpop.f32.mrb[0].mxu1 }
  0xed   : > { %v2436_v20 = vpop.f32.mrb[1].mxu0  ;;  %v2438_v21 = vpop.f32.mrb[1].mxu1  ;;  %v586_v35 = vsel (!%p1884_p5), %vm584_vm2, %v2432_v18, 0.0  ;;  %v627_v42 = vmul.f32 (!%p1884_p5), %v2432_v18, %v2432_v18  ;;  %v602_v1 = vsel (!%p1884_p5), %vm584_vm2, %v2434_v19, 0.0 }
  0xee   : > { %v585_v34 = vsel (!%p1884_p5), %vm584_vm2, %v2436_v20, 0.0  ;;  %v626_v41 = vmul.f32 (!%p1884_p5), %v2436_v20, %v2436_v20  ;;  %v600_v60 = vsel (!%p1884_p5), %vm584_vm2, %v2438_v21, 0.0 }
  0xef   : > { %v587_v37 = vadd.f32 (!%p1884_p5), %v586_v35, %v585_v34  ;;  %v643_v51 = vsel (!%p1884_p5), %vm584_vm2, %v627_v42, 0.0 }
  0xf0   : > { %v2440_v22 = vpop.f32.mrb[2].mxu0  ;;  %v2442_v23 = vpop.f32.mrb[2].mxu1  ;;  %v642_v50 = vsel (!%p1884_p5), %vm584_vm2, %v626_v41, 0.0 }
  0xf1   : > { %v2444_v24 = vpop.f32.mrb[3].mxu0  ;;  %v2446_v25 = vpop.f32.mrb[3].mxu1  ;;  %v590_v38 = vsel (!%p1884_p5), %vm584_vm2, %v2440_v22, 0.0  ;;  %v629_v46 = vmul.f32 (!%p1884_p5), %v2440_v22, %v2440_v22  ;;  %v644_v53 = vadd.f32 (!%p1884_p5), %v643_v51, %v642_v50 }
  0xf2   : > { %v588_v36 = vsel (!%p1884_p5), %vm584_vm2, %v2444_v24, 0.0  ;;  %v628_v44 = vmul.f32 (!%p1884_p5), %v2444_v24, %v2444_v24 }
  0xf3   : > { %582 = sbr.rel (%p1884_p5) target bundleno = 288 (0x120), region = 64  ;;  %v589_v39 = vadd.f32 (!%p1884_p5), %v588_v36, %v587_v37  ;;  %v647_v57 = vsel (!%p1884_p5), %vm584_vm2, %v629_v46, 0.0 }
  0xf4   : > { %v2448_v26 = vpop.f32.mrb[4].mxu0  ;;  %v2450_v27 = vpop.f32.mrb[4].mxu1  ;;  %v645_v54 = vsel (!%p1884_p5), %vm584_vm2, %v628_v44, 0.0  ;;  %v635_v44 = vmul.f32 (!%p1884_p5), %v2434_v19, %v2434_v19 }
  0xf5   : > { %v2452_v28 = vpop.f32.mrb[5].mxu0  ;;  %v2454_v29 = vpop.f32.mrb[5].mxu1  ;;  %v591_v43 = vadd.f32 (!%p1884_p5), %v590_v38, %v589_v39  ;;  %v594_v45 = vsel (!%p1884_p5), %vm584_vm2, %v2448_v26, 0.0  ;;  %v631_v56 = vmul.f32 (!%p1884_p5), %v2448_v26, %v2448_v26  ;;  %v646_v59 = vadd.f32 (!%p1884_p5), %v645_v54, %v644_v53 }
  0xf6   : > { %v592_v40 = vsel (!%p1884_p5), %vm584_vm2, %v2452_v28, 0.0  ;;  %v630_v49 = vmul.f32 (!%p1884_p5), %v2452_v28, %v2452_v28  ;;  %v604_v38 = vsel (!%p1884_p5), %vm584_vm2, %v2446_v25, 0.0  ;;  %v634_v39 = vmul.f32 (!%p1884_p5), %v2438_v21, %v2438_v21 }
  0xf7   : > { %v593_v47 = vadd.f32 (!%p1884_p5), %v592_v40, %v591_v43  ;;  %v648_v0 = vadd.f32 (!%p1884_p5), %v647_v57, %v646_v59  ;;  %v651_v35 = vsel (!%p1884_p5), %vm584_vm2, %v631_v56, 0.0  ;;  %v606_v43 = vsel (!%p1884_p5), %vm584_vm2, %v2442_v23, 0.0 }
  0xf8   : > { %v2456_v30 = vpop.f32.mrb[6].mxu0  ;;  %v2458_v31 = vpop.f32.mrb[6].mxu1  ;;  %v649_v62 = vsel (!%p1884_p5), %vm584_vm2, %v630_v49, 0.0  ;;  %v636_v49 = vmul.f32 (!%p1884_p5), %v2446_v25, %v2446_v25  ;;  %v657_v50 = vsel (!%p1884_p5), %vm584_vm2, %v634_v39, 0.0  ;;  %v610_v53 = vsel (!%p1884_p5), %vm584_vm2, %v2450_v27, 0.0 }
  0xf9   : > { %v2460_v32 = vpop.f32.mrb[7].mxu0  ;;  %v2462_v33 = vpop.f32.mrb[7].mxu1  ;;  %v595_v52 = vadd.f32 (!%p1884_p5), %v594_v45, %v593_v47  ;;  %v598_v55 = vsel (!%p1884_p5), %vm584_vm2, %v2456_v30, 0.0  ;;  %v633_v34 = vmul.f32 (!%p1884_p5), %v2456_v30, %v2456_v30  ;;  %v650_v37 = vadd.f32 (!%p1884_p5), %v649_v62, %v648_v0 }
  0xfa   : > { %v596_v48 = vsel %vm584_vm2, %v2460_v32, 0.0  ;;  %v632_v61 = vmul.f32 %v2460_v32, %v2460_v32  ;;  %v637_v54 = vmul.f32 %v2442_v23, %v2442_v23  ;;  %v638_v59 = vmul.f32 %v2454_v29, %v2454_v29 }
  0xfb   : > { %v597_v58 = vadd.f32 %v596_v48, %v595_v52  ;;  %v652_v42 = vadd.f32 %v651_v35, %v650_v37  ;;  %v655_v45 = vsel %vm584_vm2, %v633_v34, 0.0  ;;  %v608_v48 = vsel %vm584_vm2, %v2454_v29, 0.0 }
  0xfc   : > { %v653_v40 = vsel %vm584_vm2, %v632_v61, 0.0  ;;  %v639_v0 = vmul.f32 %v2450_v27, %v2450_v27  ;;  %v665_v37 = vsel %vm584_vm2, %v638_v59, 0.0 }
  0xfd   : > { %v599_v63 = vadd.f32 %v598_v55, %v597_v58  ;;  %v654_v47 = vadd.f32 %v653_v40, %v652_v42  ;;  %v659_v55 = vsel %vm584_vm2, %v635_v44, 0.0  ;;  %v612_v58 = vsel %vm584_vm2, %v2462_v33, 0.0 }
  0xfe   : > { %v641_v40 = vmul.f32 %v2458_v31, %v2458_v31 }
  0xff   : > { %v601_v36 = vadd.f32 %v600_v60, %v599_v63  ;;  %v656_v52 = vadd.f32 %v655_v45, %v654_v47  ;;  %v661_v60 = vsel %vm584_vm2, %v636_v49, 0.0  ;;  %v614_v63 = vsel %vm584_vm2, %v2458_v31, 0.0 }
 0x100   : > { %v671_v47 = vsel %vm584_vm2, %v641_v40, 0.0 }
 0x101   : > { %v603_v41 = vadd.f32 %v602_v1, %v601_v36  ;;  %v658_v57 = vadd.f32 %v657_v50, %v656_v52  ;;  %v663_v1 = vsel %vm584_vm2, %v637_v54, 0.0  ;;  %v640_v36 = vmul.f32 %v2462_v33, %v2462_v33  ;;  %v583_v54 = vld [vmem:[#allocation2] sm:$0x1] }
 0x103   : > { %v605_v46 = vadd.f32 %v604_v38, %v603_v41  ;;  %v660_v62 = vadd.f32 %v659_v55, %v658_v57  ;;  %v667_v41 = vsel %vm584_vm2, %v639_v0, 0.0  ;;  %v669_v44 = vsel %vm584_vm2, %v640_v36, 0.0 }
 0x105   : > { %v607_v51 = vadd.f32 %v606_v43, %v605_v46  ;;  %v662_v35 = vadd.f32 %v661_v60, %v660_v62 }
 0x107   : > { %v609_v56 = vadd.f32 %v608_v48, %v607_v51  ;;  %v664_v39 = vadd.f32 %v663_v1, %v662_v35 }
 0x109   : > { %v611_v61 = vadd.f32 %v610_v53, %v609_v56  ;;  %v666_v43 = vadd.f32 %v665_v37, %v664_v39 }
 0x10b   : > { %v613_v34 = vadd.f32 %v612_v58, %v611_v61  ;;  %v668_v46 = vadd.f32 %v667_v41, %v666_v43  ;;  %v625_v61 = vld [vmem:[#allocation3] sm:$0x1] }
 0x10d   : > { %v615_v38 = vadd.f32 %v614_v63, %v613_v34  ;;  %v670_v49 = vadd.f32 %v669_v44, %v668_v46 }
 0x10f   : > { %v616_v42 = vrot.slane %v615_v38, 4  ;;  %v672_v51 = vadd.f32 %v671_v47, %v670_v49 }
 0x111   : > { %v617_v45 = vadd.f32 %v616_v42, %v615_v38  ;;  %v673_v53 = vrot.slane %v672_v51, 4 }
 0x113   : > { %v618_v48 = vrot.slane %v617_v45, 2  ;;  %v674_v56 = vadd.f32 %v673_v53, %v672_v51 }
 0x115   : > { %v619_v50 = vadd.f32 %v618_v48, %v617_v45  ;;  %v675_v58 = vrot.slane %v674_v56, 2 }
 0x117   : > { %v620_v52 = vrot.slane %v619_v50, 1  ;;  %v676_v59 = vadd.f32 %v675_v58, %v674_v56 }
 0x119   : > { %v621_v55 = vadd.f32 %v620_v52, %v619_v50  ;;  %v677_v60 = vrot.slane %v676_v59, 1 }
 0x11b   : > { %v622_v57 = vadd.f32 %v621_v55, %v583_v54  ;;  %v678_v62 = vadd.f32 %v677_v60, %v676_v59 }
 0x11d   : > { %624 = vst.msk [vmem:[#allocation2] sm:$0x1] %vm623_vm3, %v622_v57  ;;  %v679_v63 = vadd.f32 %v678_v62, %v625_v61 }
 0x11f   : > { %680 = vst.msk [vmem:[#allocation3] sm:$0x1] %vm623_vm3, %v679_v63 }
 0x120 PF: > { %p1885_p6 = scmp.ne.s32.totalorder %s2234_s30, 1 }
 0x121   : > { %v843_v0 = vld [vmem:[%s2882_s4] sm:$0xff] (!%p1885_p6)  ;;  %v844_v1 = vld [vmem:[%s2882_s4 + $0x8] sm:$0xff] (!%p1885_p6)  ;;  %v845_v34 = vld [vmem:[%s2882_s4 + $0x10] sm:$0xff] (!%p1885_p6)  ;;  %v2245_v39 = vmov (!%p1885_p6), 0.0   ;;  %v700_v47 = vlaneseq (!%p1885_p6)  ;;  %vm847_vm4 = vcmask (!%p1885_p6), 261120   ;;  %vm1080_vm5 = vcmask (!%p1885_p6), 253952  }
 0x122   : > { %684 = sbr.rel (%p1885_p6) target bundleno = 590 (0x24e), region = 68  ;;  %v2126_v35 = vpack.c.bf16 (!%p1885_p6), %v844_v1, %v843_v0  ;;  %v846_v36 = vld [vmem:[%s2882_s4 + $0x18] sm:$0xff] (!%p1885_p6)  ;;  %2050 = vmatprep.mubr.f32.mxu1 (!%p1885_p6), %v2245_v39  ;;  %v692_v49 = vld [vmem:[%s2880_s2] sm:$0x1] (!%p1885_p6) }
 0x123   : > { %v2130_v40 = vpack.c.bf16 (!%p1885_p6), %v846_v36, %v845_v34  ;;  %v701_v48 = vshrl.u32 (!%p1885_p6), %v700_v47, 7  ;;  %v696_v53 = vld [vmem:[%s2881_s3] sm:$0x1] (!%p1885_p6) }
 0x124   : > { %v685_v37 = vld [vmem:[#allocation2] sm:$0x1] (!%p1885_p6)  ;;  %2127 = vmatprep.subr.bf16.mxu0 (!%p1885_p6), %v2126_v35  ;;  %2152 = vmatprep.subr.bf16.mxu1 (!%p1885_p6), %v2126_v35 }
 0x125   : > { %v686_v41 = vmul.f32 (!%p1885_p6), 0.0625, %v685_v37  ;;  %2129 = vmatpush3.bf16.msra.mxu0 (!%p1885_p6), %v2126_v35  ;;  %2154 = vmatpush3.bf16.msra.mxu1 (!%p1885_p6), %v2126_v35  ;;  %v702_v50 = vsub.s32 (!%p1885_p6), 0, %v701_v48 }
 0x126   : > { %v687_v38 = vld [vmem:[#allocation3] sm:$0x1] (!%p1885_p6)  ;;  %2131 = vmatprep.subr.bf16.mxu0 (!%p1885_p6), %v2130_v40  ;;  %2153 = vmatprep.subr.bf16.mxu1 (!%p1885_p6), %v2130_v40 }
 0x127   : > { %v688_v42 = vmul.f32 (!%p1885_p6), 0.0625, %v687_v38  ;;  %v689_v43 = vmul.f32 (!%p1885_p6), %v686_v41, %v686_v41 }
 0x129   : > { %v690_v44 = vsub.f32 %v688_v42, %v689_v43  ;;  %2133 = vmatpush3.bf16.msra.mxu0 %v2130_v40  ;;  %2155 = vmatpush3.bf16.msra.mxu1 %v2130_v40 }
 0x12b   : > { %v691_v45 = vmax.f32 %v690_v44, 0.0 }
 0x12c   : > { %2051 = vmatmul.mubr.f32.vlgmr.msra.gmra.mrb[0].mxu1 %v2245_v39 }
 0x12d   : > { %v693_v46 = vadd.f32 1e-05, %v691_v45  ;;  %2053 = vmatprep.mubr.f32.mxu1 %v2245_v39 }
 0x12f   : > { %2182 = vrsqrt.f32 %v693_v46 }
 0x130   : > { %2054 = vmatmul.mubr.f32.gmra.mrb[2].mxu1 %v2245_v39 }
 0x131   : > { %2056 = vmatprep.mubr.f32.mxu1 %v2245_v39 }
 0x134   : > { %2057 = vmatmul.mubr.f32.gmra.mrb[4].mxu1 %v2245_v39 }
 0x135   : > { %2059 = vmatprep.mubr.f32.mxu1 %v2245_v39 }
 0x138   : > { %2060 = vmatmul.mubr.f32.gmra.mrb[6].mxu1 %v2245_v39 }
 0x139   : > { %v2183_v51 = vpop.eup %2182 }
 0x13a   : > { %v695_v52 = vmul.f32 %v2183_v51, %v692_v49 }
 0x13c   : > { %v697_v54 = vmul.f32 %v695_v52, %v686_v41  ;;  %v703_v55 = vrot.slane %v695_v52, %v702_v50 }
 0x13e   : > { %v698_v56 = vsub.f32 %v696_v53, %v697_v54  ;;  %v705_v57 = vmul.f32 %v703_v55, %v2436_v20  ;;  %v706_v58 = vmul.f32 %v2432_v18, %v703_v55 }
 0x140   : > { %v725_v59 = vrot.slane %v698_v56, %v702_v50 }
 0x142   : > { %v727_v60 = vadd.f32 %v725_v59, %v705_v57  ;;  %v728_v61 = vadd.f32 %v725_v59, %v706_v58 }
 0x144   : > { %v743_v62 = vmax.f32 %v727_v60, 0.0  ;;  %v744_v63 = vmax.f32 %v728_v61, 0.0 }
 0x146   : > { %2038 = vmatprep.mubr.msk.f32.mxu0 %vm847_vm4, %v743_v62 }
 0x147   : > { %2039 = vmatmul.mubr.msk.f32.vlgmr.msra.gmra.mrb[0].mxu0 %vm847_vm4, %v744_v63 }
 0x148   : > { %2041 = vmatprep.mubr.f32.mxu0 %v2245_v39 }
 0x14b   : > { %2042 = vmatmul.mubr.f32.gmra.mrb[2].mxu0 %v2245_v39 }
 0x14c   : > { %2044 = vmatprep.mubr.f32.mxu0 %v2245_v39 }
 0x14f   : > { %2045 = vmatmul.mubr.f32.gmra.mrb[4].mxu0 %v2245_v39 }
 0x150   : > { %2047 = vmatprep.mubr.f32.mxu0 %v2245_v39 }
 0x153   : > { %2048 = vmatmul.mubr.f32.gmra.mrb[6].mxu0 %v2245_v39 }
 0x1ff   : > { %v2052_v0 = vpop.f32.mrb[0].mxu1 }
 0x200   : > { %v1002_v1 = vpop.f32.mrb[1].mxu1 }
 0x203   : > { %v2568_v34 = vpop.f32.mrb[2].mxu1 }
 0x204   : > { %v1012_v35 = vpop.f32.mrb[3].mxu1 }
 0x207   : > { %v2570_v36 = vpop.f32.mrb[4].mxu1 }
 0x208   : > { %v2572_v37 = vpop.f32.mrb[5].mxu1 }
 0x20b   : > { %v2574_v38 = vpop.f32.mrb[6].mxu1 }
 0x20c   : > { %v2576_v40 = vpop.f32.mrb[7].mxu1 }
 0x21a   : > { %v2040_v41 = vpop.f32.mrb[0].mxu0 }
 0x21b   : > { %v1043_v42 = vsel %vm847_vm4, %v2040_v41, 0.0  ;;  %v1084_v43 = vmul.f32 %v2040_v41, %v2040_v41  ;;  %v962_v44 = vpop.f32.mrb[1].mxu0 }
 0x21c   : > { %v1042_v39 = vsel %vm847_vm4, %v962_v44, 0.0  ;;  %v1083_v45 = vmul.f32 %v962_v44, %v962_v44 }
 0x21d   : > { %v1100_v46 = vsel %vm847_vm4, %v1084_v43, 0.0  ;;  %v1044_v47 = vadd.f32 %v1043_v42, %v1042_v39 }
 0x21e   : > { %v1099_v48 = vsel %vm847_vm4, %v1083_v45, 0.0  ;;  %v2043_v49 = vpop.f32.mrb[2].mxu0 }
 0x21f   : > { %v1101_v50 = vadd.f32 %v1100_v46, %v1099_v48  ;;  %v972_v51 = vpop.f32.mrb[3].mxu0  ;;  %v1086_v52 = vmul.f32 %v2043_v49, %v2043_v49  ;;  %v1047_v56 = vsel %vm847_vm4, %v2043_v49, 0.0 }
 0x220   : > { %v1045_v53 = vsel %vm847_vm4, %v972_v51, 0.0  ;;  %v1085_v54 = vmul.f32 %v972_v51, %v972_v51  ;;  %v1091_v51 = vmul.f32 %v1002_v1, %v1002_v1 }
 0x221   : > { %v1046_v55 = vadd.f32 %v1045_v53, %v1044_v47  ;;  %v1104_v62 = vsel %vm847_vm4, %v1086_v52, 0.0 }
 0x222   : > { %v1102_v57 = vsel %vm847_vm4, %v1085_v54, 0.0  ;;  %v2046_v58 = vpop.f32.mrb[4].mxu0 }
 0x223   : > { %v1103_v59 = vadd.f32 %v1102_v57, %v1101_v50  ;;  %v982_v60 = vpop.f32.mrb[5].mxu0  ;;  %v1048_v61 = vadd.f32 %v1047_v56, %v1046_v55  ;;  %v1088_v63 = vmul.f32 %v2046_v58, %v2046_v58  ;;  %v1051_v39 = vsel %vm847_vm4, %v2046_v58, 0.0 }
 0x224   : > { %v1049_v41 = vsel %vm847_vm4, %v982_v60, 0.0  ;;  %v1087_v42 = vmul.f32 %v982_v60, %v982_v60  ;;  %v1057_v58 = vsel %vm847_vm4, %v1002_v1, 0.0  ;;  %v1094_v1 = vmul.f32 %v2568_v34, %v2568_v34 }
 0x225   : > { %v1050_v43 = vadd.f32 %v1049_v41, %v1048_v61  ;;  %v1105_v44 = vadd.f32 %v1104_v62, %v1103_v59  ;;  %v1108_v50 = vsel %vm847_vm4, %v1088_v63, 0.0  ;;  %v1092_v41 = vmul.f32 %v2052_v0, %v2052_v0 }
 0x226   : > { %v1106_v45 = vsel %vm847_vm4, %v1087_v42, 0.0  ;;  %v2049_v46 = vpop.f32.mrb[6].mxu0  ;;  %v1114_v42 = vsel %vm847_vm4, %v1091_v51, 0.0  ;;  %v1093_v63 = vmul.f32 %v1012_v35, %v1012_v35 }
 0x227   : > { %v1107_v47 = vadd.f32 %v1106_v45, %v1105_v44  ;;  %v992_v48 = vpop.f32.mrb[7].mxu0  ;;  %v1052_v49 = vadd.f32 %v1051_v39, %v1050_v43  ;;  %v1090_v53 = vmul.f32 %v2049_v46, %v2049_v46  ;;  %v1055_v57 = vsel %vm847_vm4, %v2049_v46, 0.0 }
 0x228   : > { %v1053_v52 = vsel %vm847_vm4, %v992_v48, 0.0  ;;  %v1089_v54 = vmul.f32 %v992_v48, %v992_v48  ;;  %v1059_v39 = vsel %vm847_vm4, %v2052_v0, 0.0  ;;  %v1061_v45 = vsel %vm847_vm4, %v1012_v35, 0.0 }
 0x229   : > { %v1054_v55 = vadd.f32 %v1053_v52, %v1052_v49  ;;  %v1109_v56 = vadd.f32 %v1108_v50, %v1107_v47  ;;  %v1112_v62 = vsel %vm847_vm4, %v1090_v53, 0.0  ;;  %v1116_v48 = vsel %vm847_vm4, %v1092_v41, 0.0 }
 0x22a   : > { %v1110_v59 = vsel %vm847_vm4, %v1089_v54, 0.0  ;;  %v1118_v49 = vsel %vm847_vm4, %v1093_v63, 0.0  ;;  %v1095_v50 = vmul.f32 %v2572_v37, %v2572_v37  ;;  %v1063_v52 = vsel %vm847_vm4, %v2568_v34, 0.0 }
 0x22b   : > { %v1056_v60 = vadd.f32 %v1055_v57, %v1054_v55  ;;  %v1111_v61 = vadd.f32 %v1110_v59, %v1109_v56  ;;  %v1065_v0 = vsel %vm847_vm4, %v2572_v37, 0.0  ;;  %v1120_v55 = vsel %vm847_vm4, %v1094_v1, 0.0 }
 0x22c   : > { %v1096_v56 = vmul.f32 %v2570_v36, %v2570_v36  ;;  %v1122_v57 = vsel %vm847_vm4, %v1095_v50, 0.0  ;;  %v1097_v59 = vmul.f32 %v2576_v40, %v2576_v40  ;;  %v1067_v34 = vsel %vm847_vm4, %v2570_v36, 0.0 }
 0x22d   : > { %v1113_v43 = vadd.f32 %v1112_v62, %v1111_v61  ;;  %v1058_v44 = vadd.f32 %v1057_v58, %v1056_v60  ;;  %v1069_v37 = vsel %vm847_vm4, %v2576_v40, 0.0 }
 0x22e   : > { %v1124_v41 = vsel %vm847_vm4, %v1096_v56, 0.0  ;;  %v1126_v63 = vsel %vm847_vm4, %v1097_v59, 0.0  ;;  %v1082_v56 = vld [vmem:[#allocation5] sm:$0x1] }
 0x22f   : > { %v1115_v47 = vadd.f32 %v1114_v42, %v1113_v43  ;;  %v1060_v46 = vadd.f32 %v1059_v39, %v1058_v44  ;;  %v1098_v42 = vmul.f32 %v2574_v38, %v2574_v38  ;;  %v1071_v39 = vsel %vm847_vm4, %v2574_v38, 0.0 }
 0x231   : > { %v1062_v51 = vadd.f32 %v1061_v45, %v1060_v46  ;;  %v1117_v53 = vadd.f32 %v1116_v48, %v1115_v47  ;;  %v1128_v36 = vsel %vm847_vm4, %v1098_v42, 0.0 }
 0x233   : > { %v1119_v35 = vadd.f32 %v1118_v49, %v1117_v53  ;;  %v1064_v54 = vadd.f32 %v1063_v52, %v1062_v51 }
 0x235   : > { %v1066_v58 = vadd.f32 %v1065_v0, %v1064_v54  ;;  %v1121_v60 = vadd.f32 %v1120_v55, %v1119_v35  ;;  %v1041_v35 = vld [vmem:[#allocation4] sm:$0x1] }
 0x237   : > { %v1123_v61 = vadd.f32 %v1122_v57, %v1121_v60  ;;  %v1068_v62 = vadd.f32 %v1067_v34, %v1066_v58 }
 0x239   : > { %v1070_v43 = vadd.f32 %v1069_v37, %v1068_v62  ;;  %v1125_v44 = vadd.f32 %v1124_v41, %v1123_v61 }
 0x23b   : > { %v1072_v45 = vadd.f32 %v1071_v39, %v1070_v43  ;;  %v1127_v47 = vadd.f32 %v1126_v63, %v1125_v44 }
 0x23d   : > { %v1073_v46 = vrot.slane %v1072_v45, 4  ;;  %v1129_v40 = vadd.f32 %v1128_v36, %v1127_v47 }
 0x23f   : > { %v1074_v48 = vadd.f32 %v1073_v46, %v1072_v45  ;;  %v1130_v1 = vrot.slane %v1129_v40, 4 }
 0x241   : > { %v1075_v49 = vrot.slane %v1074_v48, 2  ;;  %v1131_v50 = vadd.f32 %v1130_v1, %v1129_v40 }
 0x243   : > { %v1076_v51 = vadd.f32 %v1075_v49, %v1074_v48  ;;  %v1132_v53 = vrot.slane %v1131_v50, 2 }
 0x245   : > { %v1077_v52 = vrot.slane %v1076_v51, 1  ;;  %v1133_v0 = vadd.f32 %v1132_v53, %v1131_v50 }
 0x247   : > { %v1078_v54 = vadd.f32 %v1077_v52, %v1076_v51  ;;  %v1134_v55 = vrot.slane %v1133_v0, 1 }
 0x249   : > { %v1079_v38 = vadd.f32 %v1078_v54, %v1041_v35  ;;  %v1135_v57 = vadd.f32 %v1134_v55, %v1133_v0 }
 0x24b   : > { %1081 = vst.msk [vmem:[#allocation4] sm:$0x1] %vm1080_vm5, %v1079_v38  ;;  %v1136_v59 = vadd.f32 %v1135_v57, %v1082_v56 }
 0x24d   : > { %1137 = vst.msk [vmem:[#allocation5] sm:$0x1] %vm1080_vm5, %v1136_v59 }
 0x24e PF: > { %p1888_p7 = scmp.ne.s32.totalorder %s2234_s30, 2 }
 0x24f   : > { %v1216_v58 = vld [vmem:[%s2882_s4] sm:$0xff] (!%p1888_p7)  ;;  %v1217_v60 = vld [vmem:[%s2882_s4 + $0x8] sm:$0xff] (!%p1888_p7)  ;;  %v1218_v34 = vld [vmem:[%s2882_s4 + $0x10] sm:$0xff] (!%p1888_p7)  ;;  %v1157_v36 = vlaneseq (!%p1888_p7)  ;;  %vm1220_vm6 = vcmask (!%p1888_p7), 261120  }
 0x250   : > { %1141 = sbr.rel (%p1888_p7) target bundleno = 1093 (0x445), region = 72  ;;  %v2134_v37 = vpack.c.bf16 (!%p1888_p7), %v1217_v60, %v1216_v58  ;;  %v1219_v61 = vld [vmem:[%s2882_s4 + $0x18] sm:$0xff] (!%p1888_p7)  ;;  %v1142_v62 = vld [vmem:[#allocation2] sm:$0x1] (!%p1888_p7)  ;;  %v1144_v41 = vld [vmem:[#allocation3] sm:$0x1] (!%p1888_p7) }
 0x251   : > { %v2138_v42 = vpack.c.bf16 (!%p1888_p7), %v1219_v61, %v1218_v34  ;;  %v1143_v63 = vmul.f32 (!%p1888_p7), 0.0625, %v1142_v62  ;;  %v1145_v43 = vmul.f32 (!%p1888_p7), 0.0625, %v1144_v41  ;;  %v1158_v46 = vshrl.u32 (!%p1888_p7), %v1157_v36, 7  ;;  %v1149_v40 = vld [vmem:[%s2880_s2] sm:$0x1] (!%p1888_p7) }
 0x252   : > { %2135 = vmatprep.subr.bf16.mxu0 (!%p1888_p7), %v2134_v37  ;;  %v1153_v50 = vld [vmem:[%s2881_s3] sm:$0x1] (!%p1888_p7) }
 0x253   : > { %2137 = vmatpush3.bf16.msra.mxu0 (!%p1888_p7), %v2134_v37  ;;  %v1146_v44 = vmul.f32 (!%p1888_p7), %v1143_v63, %v1143_v63  ;;  %v2641_v48 = vsub.s32 (!%p1888_p7), 0, %v1158_v46 }
 0x254   : > { %2139 = vmatprep.subr.bf16.mxu0 (!%p1888_p7), %v2138_v42 }
 0x255   : > { %v1147_v39 = vsub.f32 (!%p1888_p7), %v1145_v43, %v1146_v44 }
 0x257   : > { %2141 = vmatpush3.bf16.msra.mxu0 %v2138_v42  ;;  %v1148_v45 = vmax.f32 %v1147_v39, 0.0 }
 0x259   : > { %v1150_v47 = vadd.f32 1e-05, %v1148_v45 }
 0x25b   : > { %2184 = vrsqrt.f32 %v1150_v47 }
 0x265   : > { %v2185_v1 = vpop.eup %2184 }
 0x266   : > { %v1152_v49 = vmul.f32 %v2185_v1, %v1149_v40 }
 0x268   : > { %v1154_v51 = vmul.f32 %v1152_v49, %v1143_v63  ;;  %v1160_v53 = vrot.slane %v1152_v49, %v2641_v48 }
 0x26a   : > { %v1155_v52 = vsub.f32 %v1153_v50, %v1154_v51  ;;  %v1162_v0 = vmul.f32 %v1160_v53, %v2436_v20  ;;  %v1163_v35 = vmul.f32 %v2432_v18, %v1160_v53  ;;  %v1164_v54 = vmul.f32 %v1160_v53, %v2444_v24 }
 0x26b   : > { %v1165_v55 = vmul.f32 %v2440_v22, %v1160_v53  ;;  %v1166_v38 = vmul.f32 %v1160_v53, %v2452_v28  ;;  %v1167_v34 = vmul.f32 %v2448_v26, %v1160_v53  ;;  %v1168_v37 = vmul.f32 %v1160_v53, %v2460_v32 }
 0x26c   : > { %v1182_v56 = vrot.slane %v1155_v52, %v2641_v48  ;;  %v1169_v28 = vmul.f32 %v2456_v30, %v1160_v53  ;;  %v1170_v26 = vmul.f32 %v1160_v53, %v2438_v21  ;;  %v1171_v43 = vmul.f32 %v2434_v19, %v1160_v53 }
 0x26d   : > { %v1172_v45 = vmul.f32 %v1160_v53, %v2446_v25  ;;  %v1173_v36 = vmul.f32 %v2442_v23, %v1160_v53  ;;  %v1174_v40 = vmul.f32 %v1160_v53, %v2454_v29  ;;  %v1175_v49 = vmul.f32 %v2450_v27, %v1160_v53 }
 0x26e   : > { %v1184_v57 = vadd.f32 %v1182_v56, %v1162_v0  ;;  %v1185_v59 = vadd.f32 %v1182_v56, %v1163_v35  ;;  %v1186_v58 = vadd.f32 %v1182_v56, %v1164_v54  ;;  %v1187_v60 = vadd.f32 %v1182_v56, %v1165_v55 }
 0x26f   : > { %v1188_v62 = vadd.f32 %v1182_v56, %v1166_v38  ;;  %v1189_v24 = vadd.f32 %v1182_v56, %v1167_v34  ;;  %v1190_v42 = vadd.f32 %v1182_v56, %v1168_v37  ;;  %v1191_v63 = vadd.f32 %v1182_v56, %v1169_v28  ;;  %v1416_v34 = vld [vmem:[#allocation5] sm:$0x1] }
 0x270   : > { %v1200_v20 = vmax.f32 %v1184_v57, 0.0  ;;  %v1201_v61 = vmax.f32 %v1185_v59, 0.0  ;;  %v1202_v18 = vmax.f32 %v1186_v58, 0.0  ;;  %v1203_v22 = vmax.f32 %v1187_v60, 0.0  ;;  %v1491_v57 = vld [vmem:[%s2885_s7 + $0x18] sm:$0xff] }
 0x271   : > { %v1204_v41 = vmax.f32 %v1188_v62, 0.0  ;;  %v1205_v32 = vmax.f32 %v1189_v24, 0.0  ;;  %v1206_v44 = vmax.f32 %v1190_v42, 0.0  ;;  %v1192_v39 = vadd.f32 %v1182_v56, %v1170_v26  ;;  %v1414_v58 = vld [vmem:[#allocation4] sm:$0x1] }
 0x272   : > { %2070 = vmatprep.mubr.msk.f32.mxu0 %vm1220_vm6, %v1200_v20  ;;  %v1207_v30 = vmax.f32 %v1191_v63, 0.0  ;;  %v1193_v47 = vadd.f32 %v1182_v56, %v1171_v43  ;;  %v1194_v46 = vadd.f32 %v1182_v56, %v1172_v45  ;;  %v1195_v1 = vadd.f32 %v1182_v56, %v1173_v36  ;;  %v1421_v24 = vld [vmem:[%s2883_s5] sm:$0x1] }
 0x273   : > { %2071 = vmatmul.mubr.msk.f32.vlgmr.msra.gmra.mrb[0].mxu0 %vm1220_vm6, %v1201_v61  ;;  %v1208_v21 = vmax.f32 %v1192_v39, 0.0  ;;  %v1196_v50 = vadd.f32 %v1182_v56, %v1174_v40  ;;  %v1176_v51 = vmul.f32 %v1160_v53, %v2462_v33  ;;  %v1197_v52 = vadd.f32 %v1182_v56, %v1175_v49  ;;  %v1425_v42 = vld [vmem:[%s2884_s6] sm:$0x1] }
 0x274   : > { %2073 = vmatprep.mubr.msk.f32.mxu0 %vm1220_vm6, %v1202_v18  ;;  %v1209_v19 = vmax.f32 %v1193_v47, 0.0  ;;  %v1210_v25 = vmax.f32 %v1194_v46, 0.0  ;;  %v1211_v23 = vmax.f32 %v1195_v1, 0.0  ;;  %v1177_v0 = vmul.f32 %v2458_v31, %v1160_v53  ;;  %v1488_v31 = vld [vmem:[%s2885_s7] sm:$0xff]  ;;  %v1489_v53 = vld [vmem:[%s2885_s7 + $0x8] sm:$0xff] }
 0x275   : > { %v1212_v29 = vmax.f32 %v1196_v50, 0.0  ;;  %v1198_v35 = vadd.f32 %v1182_v56, %v1176_v51  ;;  %v1213_v54 = vmax.f32 %v1197_v52, 0.0  ;;  %v2142_v38 = vpack.c.bf16 %v1489_v53, %v1488_v31 }
 0x276   : > { %v1199_v27 = vadd.f32 %v1182_v56, %v1177_v0  ;;  %v1490_v56 = vld [vmem:[%s2885_s7 + $0x10] sm:$0xff]  ;;  %v1415_v60 = vmul.f32 0.0625, %v1414_v58  ;;  %v1417_v37 = vmul.f32 0.0625, %v1416_v34 }
 0x277   : > { %2074 = vmatmul.mubr.msk.f32.gmra.mrb[2].mxu0 %vm1220_vm6, %v1203_v22  ;;  %v1214_v55 = vmax.f32 %v1198_v35, 0.0  ;;  %2143 = vmatprep.subr.bf16.mxu1 %v2142_v38  ;;  %v2146_v59 = vpack.c.bf16 %v1491_v57, %v1490_v56 }
 0x278   : > { %2076 = vmatprep.mubr.msk.f32.mxu0 %vm1220_vm6, %v1204_v41  ;;  %v1215_v33 = vmax.f32 %v1199_v27, 0.0  ;;  %2145 = vmatpush3.bf16.msra.mxu1 %v2142_v38  ;;  %v1418_v20 = vmul.f32 %v1415_v60, %v1415_v60 }
 0x279   : > { %2147 = vmatprep.subr.bf16.mxu1 %v2146_v59 }
 0x27a   : > { %v1419_v61 = vsub.f32 %v1417_v37, %v1418_v20 }
 0x27b   : > { %2077 = vmatmul.mubr.msk.f32.gmra.mrb[4].mxu0 %vm1220_vm6, %v1205_v32 }
 0x27c   : > { %2079 = vmatprep.mubr.msk.f32.mxu0 %vm1220_vm6, %v1206_v44  ;;  %2149 = vmatpush3.bf16.msra.mxu1 %v2146_v59  ;;  %v1420_v18 = vmax.f32 %v1419_v61, 0.0 }
 0x27e   : > { %v1422_v62 = vadd.f32 1e-05, %v1420_v18 }
 0x27f   : > { %2080 = vmatmul.mubr.msk.f32.gmra.mrb[6].mxu0 %vm1220_vm6, %v1207_v30 }
 0x280   : > { %2082 = vmatprep.mubr.msk.f32.mxu0 %vm1220_vm6, %v1208_v21  ;;  %2186 = vrsqrt.f32 %v1422_v62 }
 0x283   : > { %2083 = vmatmul.mubr.msk.f32.gmra.mrb[8].mxu0 %vm1220_vm6, %v1209_v19 }
 0x284   : > { %2085 = vmatprep.mubr.msk.f32.mxu0 %vm1220_vm6, %v1210_v25 }
 0x287   : > { %2086 = vmatmul.mubr.msk.f32.gmra.mrb[10].mxu0 %vm1220_vm6, %v1211_v23 }
 0x288   : > { %2088 = vmatprep.mubr.msk.f32.mxu0 %vm1220_vm6, %v1212_v29 }
 0x28a   : > { %v2187_v22 = vpop.eup %2186 }
 0x28b   : > { %2089 = vmatmul.mubr.msk.f32.gmra.mrb[12].mxu0 %vm1220_vm6, %v1213_v54  ;;  %v1424_v28 = vmul.f32 %v2187_v22, %v1421_v24 }
 0x28c   : > { %2091 = vmatprep.mubr.msk.f32.mxu0 %vm1220_vm6, %v1214_v55 }
 0x28d   : > { %v1426_v41 = vmul.f32 %v1424_v28, %v1415_v60  ;;  %v2699_v32 = vrot.slane %v1424_v28, %v2641_v48 }
 0x28f   : > { %2092 = vmatmul.mubr.msk.f32.gmra.mrb[14].mxu0 %vm1220_vm6, %v1215_v33  ;;  %v1427_v26 = vsub.f32 %v1425_v42, %v1426_v41 }
 0x291   : > { %v2702_v63 = vrot.slane %v1427_v26, %v2641_v48 }
 0x346   : > { %v2072_v43 = vpop.f32.mrb[0].mxu0 }
 0x347   : > { %v1435_v44 = vmul.f32 %v2072_v43, %v2699_v32  ;;  %v1335_v39 = vpop.f32.mrb[1].mxu0 }
 0x348   : > { %v1434_v45 = vmul.f32 %v2699_v32, %v1335_v39 }
 0x349   : > { %v1457_v30 = vadd.f32 %v2702_v63, %v1435_v44 }
 0x34a   : > { %v2075_v47 = vpop.f32.mrb[2].mxu0  ;;  %v1456_v36 = vadd.f32 %v2702_v63, %v1434_v45 }
 0x34b   : > { %v1437_v21 = vmul.f32 %v2075_v47, %v2699_v32  ;;  %v1345_v46 = vpop.f32.mrb[3].mxu0  ;;  %v1473_v1 = vmax.f32 %v1457_v30, 0.0 }
 0x34c   : > { %v1436_v40 = vmul.f32 %v2699_v32, %v1345_v46  ;;  %v1472_v19 = vmax.f32 %v1456_v36, 0.0 }
 0x34d   : > { %v1459_v48 = vadd.f32 %v2702_v63, %v1437_v21 }
 0x34e   : > { %v1458_v49 = vadd.f32 %v2702_v63, %v1436_v40  ;;  %v2078_v25 = vpop.f32.mrb[4].mxu0  ;;  %2102 = vmatprep.mubr.msk.f32.mxu1 %vm1220_vm6, %v1472_v19 }
 0x34f   : > { %v1439_v50 = vmul.f32 %v2078_v25, %v2699_v32  ;;  %v1355_v51 = vpop.f32.mrb[5].mxu0  ;;  %2103 = vmatmul.mubr.msk.f32.vlgmr.msra.gmra.mrb[0].mxu1 %vm1220_vm6, %v1473_v1  ;;  %v1475_v0 = vmax.f32 %v1459_v48, 0.0 }
 0x350   : > { %v1474_v23 = vmax.f32 %v1458_v49, 0.0  ;;  %v1438_v52 = vmul.f32 %v2699_v32, %v1355_v51 }
 0x351   : > { %v1461_v29 = vadd.f32 %v2702_v63, %v1439_v50 }
 0x352   : > { %v1460_v35 = vadd.f32 %v2702_v63, %v1438_v52  ;;  %v2081_v54 = vpop.f32.mrb[6].mxu0  ;;  %2105 = vmatprep.mubr.msk.f32.mxu1 %vm1220_vm6, %v1474_v23  ;;  %v1693_v52 = vmul.f32 %v2333_v4, %v2333_v4  ;;  %v1696_v4 = vmul.f32 %v2375_v10, %v2375_v10 }
 0x353   : > { %v1441_v27 = vmul.f32 %v2081_v54, %v2699_v32  ;;  %v1365_v55 = vpop.f32.mrb[7].mxu0  ;;  %2106 = vmatmul.mubr.msk.f32.gmra.mrb[2].mxu1 %vm1220_vm6, %v1475_v0  ;;  %v1477_v53 = vmax.f32 %v1461_v29, 0.0 }
 0x354   : > { %v1476_v33 = vmax.f32 %v1460_v35, 0.0  ;;  %v1440_v31 = vmul.f32 %v2699_v32, %v1365_v55  ;;  %v1709_v0 = vmul.f32 -1.0204082, %v1693_v52  ;;  %v1694_v35 = vmul.f32 %v2343_v6, %v2343_v6 }
 0x355   : > { %v1463_v38 = vadd.f32 %v2702_v63, %v1441_v27  ;;  %v1697_v55 = vmul.f32 %v2393_v12, %v2393_v12  ;;  %v1698_v6 = vmul.f32 %v2403_v14, %v2403_v14  ;;  %v1701_v12 = vmul.f32 %v2338_v5, %v2338_v5 }
 0x356   : > { %v1462_v56 = vadd.f32 %v2702_v63, %v1440_v31  ;;  %v2084_v57 = vpop.f32.mrb[8].mxu0  ;;  %2108 = vmatprep.mubr.msk.f32.mxu1 %vm1220_vm6, %v1476_v33  ;;  %v1726_v54 = vmul.f32 1.442695, %v1709_v0  ;;  %v1710_v31 = vmul.f32 -1.0204082, %v1694_v35  ;;  %v1703_v5 = vmul.f32 %v2370_v9, %v2370_v9 }
 0x357   : > { %v1443_v59 = vmul.f32 %v2084_v57, %v2699_v32  ;;  %v1375_v58 = vpop.f32.mrb[9].mxu0  ;;  %2109 = vmatmul.mubr.msk.f32.gmra.mrb[4].mxu1 %vm1220_vm6, %v1477_v53  ;;  %v1479_v37 = vmax.f32 %v1463_v38, 0.0  ;;  %v1713_v53 = vmul.f32 -1.0204082, %v1697_v55  ;;  %v1700_v57 = vmul.f32 %v2328_v3, %v2328_v3 }
 0x358   : > { %v1478_v60 = vmax.f32 %v1462_v56, 0.0  ;;  %v1442_v34 = vmul.f32 %v2699_v32, %v1375_v58  ;;  %2188 = vpow2.f32 %v1726_v54  ;;  %v1728_v38 = vmul.f32 1.442695, %v1710_v31 }
 0x359   : > { %v1465_v20 = vadd.f32 %v2702_v63, %v1443_v59  ;;  %v1712_v56 = vmul.f32 -1.0204082, %v1696_v4  ;;  %v1734_v10 = vmul.f32 1.442695, %v1713_v53  ;;  %v1705_v9 = vmul.f32 %v2398_v13, %v2398_v13 }
 0x35a   : > { %v1464_v61 = vadd.f32 %v2702_v63, %v1442_v34  ;;  %v2087_v18 = vpop.f32.mrb[10].mxu0  ;;  %2111 = vmatprep.mubr.msk.f32.mxu1 %vm1220_vm6, %v1478_v60  ;;  %v1714_v60 = vmul.f32 -1.0204082, %v1698_v6  ;;  %v1717_v34 = vmul.f32 -1.0204082, %v1701_v12 }
 0x35b   : > { %v1445_v62 = vmul.f32 %v2087_v18, %v2699_v32  ;;  %v1385_v22 = vpop.f32.mrb[11].mxu0  ;;  %2112 = vmatmul.mubr.msk.f32.gmra.mrb[6].mxu1 %vm1220_vm6, %v1479_v37  ;;  %v1481_v41 = vmax.f32 %v1465_v20, 0.0  ;;  %v1732_v58 = vmul.f32 1.442695, %v1712_v56  ;;  %v2775_v37 = vld [vmem:[%s2886_s8] ss:$0 sm:$0xff]  ;;  %v1702_v20 = vmul.f32 %v2348_v7, %v2348_v7 }
 0x35c   : > { %v1480_v24 = vmax.f32 %v1464_v61, 0.0  ;;  %v1444_v28 = vmul.f32 %v2699_v32, %v1385_v22  ;;  %v1736_v3 = vmul.f32 1.442695, %v1714_v60  ;;  %v1704_v7 = vmul.f32 %v2380_v11, %v2380_v11 }
 0x35d   : > { %v1467_v42 = vadd.f32 %v2702_v63, %v1445_v62  ;;  %v1742_v62 = vmul.f32 1.442695, %v1717_v34 }
 0x35e   : > { %v1466_v26 = vadd.f32 %v2702_v63, %v1444_v28  ;;  %v2090_v43 = vpop.f32.mrb[12].mxu0  ;;  %2114 = vmatprep.mubr.msk.f32.mxu1 %vm1220_vm6, %v1480_v24 }
 0x35f   : > { %v1447_v44 = vmul.f32 %v2090_v43, %v2699_v32  ;;  %v1395_v39 = vpop.f32.mrb[13].mxu0  ;;  %2115 = vmatmul.mubr.msk.f32.gmra.mrb[8].mxu1 %vm1220_vm6, %v1481_v41  ;;  %v1483_v47 = vmax.f32 %v1467_v42, 0.0 }
 0x360   : > { %v1482_v45 = vmax.f32 %v1466_v26, 0.0  ;;  %v1446_v30 = vmul.f32 %v2699_v32, %v1395_v39  ;;  %v1719_v26 = vmul.f32 -1.0204082, %v1703_v5 }
 0x361   : > { %v1469_v36 = vadd.f32 %v2702_v63, %v1447_v44  ;;  %v1718_v44 = vmul.f32 -1.0204082, %v1702_v20 }
 0x362   : > { %v1468_v21 = vadd.f32 %v2702_v63, %v1446_v30  ;;  %v2093_v46 = vpop.f32.mrb[14].mxu0  ;;  %2117 = vmatprep.mubr.msk.f32.mxu1 %vm1220_vm6, %v1482_v45  ;;  %v2189_v61 = vpop.eup %2188  ;;  %v1746_v13 = vmul.f32 1.442695, %v1719_v26 }
 0x363   : > { %v1449_v40 = vmul.f32 %v2093_v46, %v2699_v32  ;;  %v1405_v19 = vpop.f32.mrb[15].mxu0  ;;  %2118 = vmatmul.mubr.msk.f32.gmra.mrb[10].mxu1 %vm1220_vm6, %v1483_v47  ;;  %v1485_v49 = vmax.f32 %v1469_v36, 0.0  ;;  %v1721_v46 = vmul.f32 -1.0204082, %v1705_v9 }
 0x364   : > { %v1484_v1 = vmax.f32 %v1468_v21, 0.0  ;;  %v1448_v48 = vmul.f32 %v2699_v32, %v1405_v19  ;;  %v1692_v32 = vmul.f32 %v2323_v2, %v2323_v2 }
 0x365   : > { %v1471_v25 = vadd.f32 %v2702_v63, %v1449_v40  ;;  %v1707_v40 = vmul.f32 %v2426_v17, %v2426_v17 }
 0x366   : > { %v1470_v50 = vadd.f32 %v2702_v63, %v1448_v48  ;;  %2120 = vmatprep.mubr.msk.f32.mxu1 %vm1220_vm6, %v1484_v1  ;;  %v1695_v63 = vmul.f32 %v2365_v8, %v2365_v8  ;;  %v1708_v29 = vmul.f32 -1.0204082, %v1692_v32  ;;  %v1699_v8 = vmul.f32 %v2421_v16, %v2421_v16 }
 0x367   : > { %2121 = vmatmul.mubr.msk.f32.gmra.mrb[12].mxu1 %vm1220_vm6, %v1485_v49  ;;  %v1487_v23 = vmax.f32 %v1471_v25, 0.0  ;;  %v1716_v16 = vmul.f32 -1.0204082, %v1700_v57  ;;  %v1744_v1 = vmul.f32 1.442695, %v1718_v44  ;;  %v1706_v49 = vmul.f32 %v2408_v15, %v2408_v15 }
 0x368   : > { %v1486_v51 = vmax.f32 %v1470_v50, 0.0  ;;  %v1711_v27 = vmul.f32 -1.0204082, %v1695_v63  ;;  %v1724_v33 = vmul.f32 1.442695, %v1708_v29 }
 0x369   : > { %v1715_v59 = vmul.f32 -1.0204082, %v1699_v8  ;;  %v1740_v41 = vmul.f32 1.442695, %v1716_v16  ;;  %v1720_v48 = vmul.f32 -1.0204082, %v1704_v7 }
 0x36a   : > { %2123 = vmatprep.mubr.msk.f32.mxu1 %vm1220_vm6, %v1486_v51  ;;  %v1730_v2 = vmul.f32 1.442695, %v1711_v27  ;;  %2190 = vpow2.f32 %v1724_v33  ;;  %v1750_v15 = vmul.f32 1.442695, %v1721_v46  ;;  %v1723_v0 = vmul.f32 -1.0204082, %v1707_v40 }
 0x36b   : > { %2124 = vmatmul.mubr.msk.f32.gmra.mrb[14].mxu1 %vm1220_vm6, %v1487_v23  ;;  %v1738_v14 = vmul.f32 1.442695, %v1715_v59  ;;  %v1748_v29 = vmul.f32 1.442695, %v1720_v48  ;;  %v1722_v35 = vmul.f32 -1.0204082, %v1706_v49 }
 0x36c   : > { %2192 = vpow2.f32 %v1730_v2  ;;  %v1754_v8 = vmul.f32 1.442695, %v1723_v0 }
 0x36d   : > { %2194 = vpow2.f32 %v1728_v38  ;;  %v1752_v6 = vmul.f32 1.442695, %v1722_v35 }
 0x36e   : > { %2196 = vpow2.f32 %v1734_v10 }
 0x36f   : > { %2198 = vpow2.f32 %v1732_v58 }
 0x370   : > { %2200 = vpow2.f32 %v1738_v14 }
 0x371   : > { %2202 = vpow2.f32 %v1736_v3 }
 0x372   : > { %2204 = vpow2.f32 %v1742_v62 }
 0x373   : > { %2206 = vpow2.f32 %v1740_v41 }
 0x374   : > { %v2191_v22 = vpop.eup %2190  ;;  %2208 = vpow2.f32 %v1746_v13 }
 0x375   : > { %2210 = vpow2.f32 %v1744_v1 }
 0x376   : > { %v2193_v39 = vpop.eup %2192  ;;  %2212 = vpow2.f32 %v1750_v15 }
 0x377   : > { %v2195_v47 = vpop.eup %2194  ;;  %2214 = vpow2.f32 %v1748_v29 }
 0x378   : > { %v2197_v25 = vpop.eup %2196  ;;  %2216 = vpow2.f32 %v1754_v8 }
 0x379   : > { %v2199_v23 = vpop.eup %2198  ;;  %2218 = vpow2.f32 %v1752_v6 }
 0x37a   : > { %v2201_v54 = vpop.eup %2200 }
 0x37b   : > { %v2203_v33 = vpop.eup %2202 }
 0x37c   : > { %v2205_v2 = vpop.eup %2204 }
 0x37d   : > { %v2207_v38 = vpop.eup %2206 }
 0x37e   : > { %v2209_v34 = vpop.eup %2208 }
 0x37f   : > { %v2211_v5 = vpop.eup %2210 }
 0x380   : > { %v2213_v62 = vpop.eup %2212 }
 0x422   : > { %v2104_v18 = vpop.f32.mrb[0].mxu1 }
 0x423   : > { %v1619_v24 = vadd.f32 %v2104_v18, %v2775_v37  ;;  %v1613_v28 = vpop.f32.mrb[1].mxu1 }
 0x424   : > { %v1614_v42 = vadd.f32 %v2775_v37, %v1613_v28  ;;  %v2215_v28 = vpop.eup %2214 }
 0x425   : > { %v1757_v43 = vmul.f32 %v2189_v61, %v1619_v24 }
 0x426   : > { %v1756_v45 = vmul.f32 %v2191_v22, %v1614_v42  ;;  %v2107_v30 = vpop.f32.mrb[2].mxu1 }
 0x427   : > { %1773 = vst.msk [vmem:[%s2887_s9 + $0x8] sm:$0xff] %vm386_vm1, %v1757_v43  ;;  %v1629_v36 = vadd.f32 %v2107_v30, %v2775_v37  ;;  %v1623_v21 = vpop.f32.mrb[3].mxu1  ;;  %v2217_v43 = vpop.eup %2216 }
 0x428   : > { %1772 = vst.msk [vmem:[%s2887_s9] sm:$0xff] %vm386_vm1, %v1756_v45  ;;  %v1624_v11 = vadd.f32 %v2775_v37, %v1623_v21 }
 0x429   : > { %v1759_v19 = vmul.f32 %v2193_v39, %v1629_v36  ;;  %v2219_v39 = vpop.eup %2218 }
 0x42a   : > { %v1758_v50 = vmul.f32 %v2195_v47, %v1624_v11  ;;  %v2110_v51 = vpop.f32.mrb[4].mxu1 }
 0x42b   : > { %1775 = vst.msk [vmem:[%s2887_s9 + $0x18] sm:$0xff] %vm386_vm1, %v1759_v19  ;;  %v1639_v52 = vadd.f32 %v2110_v51, %v2775_v37  ;;  %v1633_v32 = vpop.f32.mrb[5].mxu1 }
 0x42c   : > { %1774 = vst.msk [vmem:[%s2887_s9 + $0x10] sm:$0xff] %vm386_vm1, %v1758_v50  ;;  %v1634_v17 = vadd.f32 %v2775_v37, %v1633_v32 }
 0x42d   : > { %v1761_v63 = vmul.f32 %v2197_v25, %v1639_v52 }
 0x42e   : > { %v1760_v27 = vmul.f32 %v2199_v23, %v1634_v17  ;;  %v2113_v55 = vpop.f32.mrb[6].mxu1 }
 0x42f   : > { %1777 = vst.msk [vmem:[%s2887_s9 + $0x28] sm:$0xff] %vm386_vm1, %v1761_v63  ;;  %v1649_v31 = vadd.f32 %v2113_v55, %v2775_v37  ;;  %v1643_v4 = vpop.f32.mrb[7].mxu1 }
 0x430   : > { %1776 = vst.msk [vmem:[%s2887_s9 + $0x20] sm:$0xff] %vm386_vm1, %v1760_v27  ;;  %v1644_v53 = vadd.f32 %v2775_v37, %v1643_v4 }
 0x431   : > { %v1763_v56 = vmul.f32 %v2201_v54, %v1649_v31 }
 0x432   : > { %v1762_v12 = vmul.f32 %v2203_v33, %v1644_v53  ;;  %v2116_v57 = vpop.f32.mrb[8].mxu1 }
 0x433   : > { %1779 = vst.msk [vmem:[%s2887_s9 + $0x38] sm:$0xff] %vm386_vm1, %v1763_v56  ;;  %v1659_v10 = vadd.f32 %v2116_v57, %v2775_v37  ;;  %v1653_v59 = vpop.f32.mrb[9].mxu1 }
 0x434   : > { %1778 = vst.msk [vmem:[%s2887_s9 + $0x30] sm:$0xff] %vm386_vm1, %v1762_v12  ;;  %v1654_v58 = vadd.f32 %v2775_v37, %v1653_v59 }
 0x435   : > { %v1765_v60 = vmul.f32 %v2205_v2, %v1659_v10 }
 0x436   : > { %v1764_v16 = vmul.f32 %v2207_v38, %v1654_v58  ;;  %v2119_v14 = vpop.f32.mrb[10].mxu1 }
 0x437   : > { %1781 = vst.msk [vmem:[%s2887_s9 + $0x48] sm:$0xff] %vm386_vm1, %v1765_v60  ;;  %v1669_v3 = vadd.f32 %v2119_v14, %v2775_v37  ;;  %v1663_v20 = vpop.f32.mrb[11].mxu1 }
 0x438   : > { %1780 = vst.msk [vmem:[%s2887_s9 + $0x40] sm:$0xff] %vm386_vm1, %v1764_v16  ;;  %v1664_v61 = vadd.f32 %v2775_v37, %v1663_v20 }
 0x439   : > { %v1767_v18 = vmul.f32 %v2209_v34, %v1669_v3 }
 0x43a   : > { %v1766_v22 = vmul.f32 %v2211_v5, %v1664_v61  ;;  %v2122_v24 = vpop.f32.mrb[12].mxu1 }
 0x43b   : > { %1783 = vst.msk [vmem:[%s2887_s9 + $0x58] sm:$0xff] %vm386_vm1, %v1767_v18  ;;  %v1679_v41 = vadd.f32 %v2122_v24, %v2775_v37  ;;  %v1673_v42 = vpop.f32.mrb[13].mxu1 }
 0x43c   : > { %1782 = vst.msk [vmem:[%s2887_s9 + $0x50] sm:$0xff] %vm386_vm1, %v1766_v22  ;;  %v1674_v26 = vadd.f32 %v2775_v37, %v1673_v42 }
 0x43d   : > { %v1769_v9 = vmul.f32 %v2213_v62, %v1679_v41 }
 0x43e   : > { %v1768_v44 = vmul.f32 %v2215_v28, %v1674_v26  ;;  %v2125_v7 = vpop.f32.mrb[14].mxu1 }
 0x43f   : > { %1785 = vst.msk [vmem:[%s2887_s9 + $0x68] sm:$0xff] %vm386_vm1, %v1769_v9  ;;  %v1689_v45 = vadd.f32 %v2125_v7, %v2775_v37  ;;  %v1683_v30 = vpop.f32.mrb[15].mxu1 }
 0x440   : > { %1784 = vst.msk [vmem:[%s2887_s9 + $0x60] sm:$0xff] %vm386_vm1, %v1768_v44  ;;  %v1684_v47 = vadd.f32 %v2775_v37, %v1683_v30 }
 0x441   : > { %v1771_v36 = vmul.f32 %v2217_v43, %v1689_v45 }
 0x442   : > { %v1770_v21 = vmul.f32 %v2219_v39, %v1684_v47 }
 0x443   : > { %1787 = vst.msk [vmem:[%s2887_s9 + $0x78] sm:$0xff] %vm386_vm1, %v1771_v36 }
 0x444   : > { %1786 = vst.msk [vmem:[%s2887_s9 + $0x70] sm:$0xff] %vm386_vm1, %v1770_v21 }
 0x445 PF: > { %s19_s11 = sadd.s32 1, %s2242_s11   ;;  %s2888_s30 = smov %s2238_s10 }
 0x446   : > { %p16_p8 = scmp.ge.s32.totalorder %s19_s11, 5   ;;  %s2889_s10 = smov %s2891_s12 }
 0x448   :  { %18 = sbr.rel (!%p16_p8) target bundleno = 2 (0x2), region = 102 }

</bundles_post_ra>
